<compile_context>
chip_gen: v7x
topology: tpu7x:2x2x1
jax: 0.10.0
libtpu: 0.0.40
codegen_flags: <defaults>
</compile_context>

<pallas_src>
import functools

import jax
import jax.numpy as jnp
from jax.experimental import pallas as pl
from jax.experimental.pallas import tpu as pltpu

# ----- synthetic "D" dimensions -------------------------------------------------
CHAR_SIZE = 30
VOCAB_SIZE = 50
CHAR_EMBEDDING_DIM = 16
WORD_EMBEDDING_DIM = 16
EMB_HIDDEN_DIM = 32
HIDDEN_DIM = 32
TAG_SIZE = 8

SENT_LEN = 8      # number of words in the sentence
CHARS_PER_WORD = 6


# ----- fused Pallas kernel -------------------------------------------------------
def _lstm_cell(gates, c_prev, hidden_dim):
  """One LSTM cell update from pre-activation gates (PyTorch order i,f,g,o).

  4H == 128 lanes, so `gates` is one f32 vreg row-set: apply sigmoid once to the
  whole vreg (covers i, f, o), tanh only on the g slice.
  """
  h = hidden_dim
  sig = jax.nn.sigmoid(gates)                      # full-vreg sigmoid (EUP)
  i_g = sig[:, 0 * h:1 * h]
  f_g = sig[:, 1 * h:2 * h]
  o_g = sig[:, 3 * h:4 * h]
  g_g = jnp.tanh(gates[:, 2 * h:3 * h])            # only the g slice needs tanh
  c_new = f_g * c_prev + i_g * g_g
  h_new = o_g * jnp.tanh(c_new)
  return h_new, c_new


def _fused_kernel(char_ids_ref, word_ids_ref,
                  char_emb_ref, word_emb_ref,
                  emb_w_ref, emb_b_ref,
                  pos_w_ref, pos_b_ref,
                  w_tag_ref, b_tag_ref,
                  out_ref,
                  *, n_words, n_chars, emb_hidden, pos_hidden,
                  char_size, vocab_size):
  S, Tc, He, H = n_words, n_chars, emb_hidden, pos_hidden

  # ---------- char LSTM: words are the batch, Tc timesteps, zero init ----------
  char_ids = char_ids_ref[...]                     # (S, Tc) int32
  char_table = char_emb_ref[...]                   # (char_size, Ce)
  emb_w = emb_w_ref[...]                           # (Ce+He, 4He)  [Wih; Whh]
  emb_b = jnp.broadcast_to(emb_b_ref[...], (S, 4 * He))   # hoisted broadcast
  char_iota = jax.lax.broadcasted_iota(jnp.int32, (S, char_size), 1)

  h = jnp.zeros((S, He), jnp.float32)
  c = jnp.zeros((S, He), jnp.float32)
  # Static trip-count (Tc=6): fully unrolled straight-line code, no grid steps.
  for t in range(Tc):
    one_hot = (char_iota == char_ids[:, t:t + 1]).astype(jnp.float32)   # (S, Cs)
    x_t = jnp.dot(one_hot, char_table,
                  preferred_element_type=jnp.float32)                   # (S, Ce)
    xh = jnp.concatenate([x_t, h], axis=1)                              # (S, Ce+He)
    gates = jnp.dot(xh, emb_w, preferred_element_type=jnp.float32) + emb_b
    h, c = _lstm_cell(gates, c, He)
  char_feats = h                                   # (S, He): final hidden per word

  # ---------- word embeddings (one-hot matmul) + concat ----------
  word_ids = word_ids_ref[...]                     # (S, 1) int32
  word_iota = jax.lax.broadcasted_iota(jnp.int32, (S, vocab_size), 1)
  word_one_hot = (word_iota == word_ids).astype(jnp.float32)            # (S, Vs)
  word_embeds = jnp.dot(word_one_hot, word_emb_ref[...],
                        preferred_element_type=jnp.float32)             # (S, We)
  pos_in = jnp.concatenate([word_embeds, char_feats], axis=1)           # (S, We+He)

  # ---------- POS LSTM: batch = 1, S timesteps, zero init ----------
  pos_w = pos_w_ref[...]                           # (We+He+H, 4H)  [Wih; Whh]
  pos_b = pos_b_ref[...]                           # (1, 4H)
  hp = jnp.zeros((1, H), jnp.float32)
  cp = jnp.zeros((1, H), jnp.float32)
  hs = []
  for t in range(S):                               # static trip count (S=8)
    x_t = pos_in[t:t + 1, :]                       # (1, We+He), static slice
    xh = jnp.concatenate([x_t, hp], axis=1)        # (1, We+He+H)
    gates = jnp.dot(xh, pos_w, preferred_element_type=jnp.float32) + pos_b
    hp, cp = _lstm_cell(gates, cp, H)
    hs.append(hp)
  pos_h = jnp.concatenate(hs, axis=0)              # (S, H)

  # ---------- tag head: Linear + log_softmax(dim=1) ----------
  logits = (jnp.dot(pos_h, w_tag_ref[...], preferred_element_type=jnp.float32)
            + b_tag_ref[...])                      # (S, TAG)
  m = jnp.max(logits, axis=1, keepdims=True)
  shifted = logits - m
  lse = jnp.log(jnp.sum(jnp.exp(shifted), axis=1, keepdims=True))
  out_ref[...] = shifted - lse


# ----- parameter init (deterministic, mimics PyTorch default shapes) -------------
def init_params(key):
  ks = jax.random.split(key, 12)

  def unif(k, shape, bound):
    return jax.random.uniform(k, shape, jnp.float32, -bound, bound)

  k_emb = 1.0 / jnp.sqrt(EMB_HIDDEN_DIM)
  k_pos = 1.0 / jnp.sqrt(HIDDEN_DIM)
  k_lin = 1.0 / jnp.sqrt(HIDDEN_DIM)
  pos_in_dim = EMB_HIDDEN_DIM + WORD_EMBEDDING_DIM

  # LSTM weights drawn in PyTorch layout then pre-transposed to [in, 4H] and
  # pre-concatenated [Wih; Whh] so the kernel does one matmul per timestep.
  emb_wih = unif(ks[2], (CHAR_EMBEDDING_DIM, 4 * EMB_HIDDEN_DIM), k_emb)
  emb_whh = unif(ks[3], (EMB_HIDDEN_DIM, 4 * EMB_HIDDEN_DIM), k_emb)
  pos_wih = unif(ks[6], (pos_in_dim, 4 * HIDDEN_DIM), k_pos)
  pos_whh = unif(ks[7], (HIDDEN_DIM, 4 * HIDDEN_DIM), k_pos)

  return dict(
      char_emb=jax.random.normal(ks[0], (CHAR_SIZE, CHAR_EMBEDDING_DIM),
                                 jnp.float32),
      word_emb=jax.random.normal(ks[1], (VOCAB_SIZE, WORD_EMBEDDING_DIM),
                                 jnp.float32),
      # EMB_lstm (char LSTM): fused [Wih; Whh] of shape (Ce+He, 4He)
      emb_w=jnp.concatenate([emb_wih, emb_whh], axis=0),
      emb_b=(unif(ks[4], (1, 4 * EMB_HIDDEN_DIM), k_emb)
             + unif(ks[5], (1, 4 * EMB_HIDDEN_DIM), k_emb)),   # b_ih + b_hh
      # POS_lstm: fused [Wih; Whh] of shape (We+He+H, 4H)
      pos_w=jnp.concatenate([pos_wih, pos_whh], axis=0),
      pos_b=(unif(ks[8], (1, 4 * HIDDEN_DIM), k_pos)
             + unif(ks[9], (1, 4 * HIDDEN_DIM), k_pos)),
      # hidden2tag
      w_tag=unif(ks[10], (HIDDEN_DIM, TAG_SIZE), k_lin),
      b_tag=unif(ks[11], (1, TAG_SIZE), k_lin),
  )


# ----- forward (matches LSTMChar.forward), one fused pallas_call -----------------
@jax.jit
def lstm_char_forward(params, sentence, char_list):
  """sentence: (S,) int32 word ids; char_list: (S, Tc) int32 char ids.

  Returns log-softmax tag scores of shape (S, TAG_SIZE).
  """
  S = sentence.shape[0]
  Tc = char_list.shape[1]
  word_ids = sentence.reshape(S, 1).astype(jnp.int32)
  char_ids = char_list.astype(jnp.int32)

  kernel = functools.partial(
      _fused_kernel,
      n_words=S, n_chars=Tc,
      emb_hidden=EMB_HIDDEN_DIM, pos_hidden=HIDDEN_DIM,
      char_size=CHAR_SIZE, vocab_size=VOCAB_SIZE)

  # No grid: all operands (a few KB total) live in VMEM for the whole kernel;
  # only the final (S, TAG_SIZE) result goes back to HBM.
  return pl.pallas_call(
      kernel,
      out_shape=jax.ShapeDtypeStruct((S, TAG_SIZE), jnp.float32),
  )(char_ids, word_ids,
    params["char_emb"], params["word_emb"],
    params["emb_w"], params["emb_b"],
    params["pos_w"], params["pos_b"],
    params["w_tag"], params["b_tag"])


if __name__ == "__main__":
  key = jax.random.PRNGKey(0)
  k_params, k_sent, k_chars = jax.random.split(key, 3)

  params = init_params(k_params)
  sentence = jax.random.randint(k_sent, (SENT_LEN,), 0, VOCAB_SIZE, jnp.int32)
  char_list = jax.random.randint(k_chars, (SENT_LEN, CHARS_PER_WORD), 0,
                                 CHAR_SIZE, jnp.int32)

  tag_scores = lstm_char_forward(params, sentence, char_list)
  tag_scores = jax.block_until_ready(tag_scores)

  assert tag_scores.shape == (SENT_LEN, TAG_SIZE)
  # log_softmax rows must (approximately) exponentiate-sum to 1
  assert jnp.allclose(jnp.sum(jnp.exp(tag_scores), axis=1), 1.0, atol=1e-3)
  print("KERNEL_OK")
</pallas_src>

<mosaic_0001>
module attributes {stable_mosaic.version = 11 : i64} {
  func.func @_fused_kernel(%arg0: memref<8x6xi32, #tpu.memory_space<vmem>>, %arg1: memref<8x1xi32, #tpu.memory_space<vmem>>, %arg2: memref<30x16xf32, #tpu.memory_space<vmem>>, %arg3: memref<50x16xf32, #tpu.memory_space<vmem>>, %arg4: memref<48x128xf32, #tpu.memory_space<vmem>>, %arg5: memref<1x128xf32, #tpu.memory_space<vmem>>, %arg6: memref<80x128xf32, #tpu.memory_space<vmem>>, %arg7: memref<1x128xf32, #tpu.memory_space<vmem>>, %arg8: memref<32x8xf32, #tpu.memory_space<vmem>>, %arg9: memref<1x8xf32, #tpu.memory_space<vmem>>, %arg10: memref<8x8xf32, #tpu.memory_space<vmem>>) attributes {dimension_semantics = [], scalar_prefetch = 0 : i64, scratch_operands = 0 : i64, tpu.core_type = #tpu.core_type<tc>} {
    %c0 = arith.constant 0 : index
    %c0_0 = arith.constant 0 : index
    %0 = vector.load %arg0[%c0, %c0_0] : memref<8x6xi32, #tpu.memory_space<vmem>>, vector<8x6xi32>
    %c0_1 = arith.constant 0 : index
    %c0_2 = arith.constant 0 : index
    %1 = vector.load %arg2[%c0_1, %c0_2] : memref<30x16xf32, #tpu.memory_space<vmem>>, vector<30x16xf32>
    %c0_3 = arith.constant 0 : index
    %c0_4 = arith.constant 0 : index
    %2 = vector.load %arg4[%c0_3, %c0_4] : memref<48x128xf32, #tpu.memory_space<vmem>>, vector<48x128xf32>
    %c0_5 = arith.constant 0 : index
    %c0_6 = arith.constant 0 : index
    %3 = vector.load %arg5[%c0_5, %c0_6] : memref<1x128xf32, #tpu.memory_space<vmem>>, vector<1x128xf32>
    %4 = vector.shape_cast %3 : vector<1x128xf32> to vector<1x128xf32>
    %5 = vector.broadcast %4 : vector<1x128xf32> to vector<8x128xf32>
    %6 = tpu.iota {dimensions = array<i32: 1>} : vector<8x30xi32>
    %cst = arith.constant 0.000000e+00 : f32
    %7 = vector.broadcast %cst : f32 to vector<8x32xf32>
    %cst_7 = arith.constant 0.000000e+00 : f32
    %8 = vector.broadcast %cst_7 : f32 to vector<8x32xf32>
    %9 = vector.extract_strided_slice %0 {offsets = [0, 0], sizes = [8, 1], strides = [1, 1]} : vector<8x6xi32> to vector<8x1xi32>
    %10 = vector.broadcast %9 : vector<8x1xi32> to vector<8x30xi32>
    %11 = arith.cmpi eq, %6, %10 : vector<8x30xi32>
    %12 = arith.extui %11 : vector<8x30xi1> to vector<8x30xi32>
    %13 = arith.sitofp %12 : vector<8x30xi32> to vector<8x30xf32>
    %cst_8 = arith.constant dense<0.000000e+00> : vector<8x16xf32>
    %14 = tpu.matmul %13, %1, %cst_8 {dimension_numbers = #tpu.dot_dimension_numbers<[1], [0], [0], [1], [0, 0, 1, 1], [], []>} : vector<8x30xf32>, vector<30x16xf32>, vector<8x16xf32> -> vector<8x16xf32>
    %15 = tpu.concatenate %14, %7 in 1 : vector<8x16xf32>, vector<8x32xf32> -> vector<8x48xf32>
    %cst_9 = arith.constant dense<0.000000e+00> : vector<8x128xf32>
    %16 = tpu.matmul %15, %2, %cst_9 {dimension_numbers = #tpu.dot_dimension_numbers<[1], [0], [0], [1], [0, 0, 1, 1], [], []>} : vector<8x48xf32>, vector<48x128xf32>, vector<8x128xf32> -> vector<8x128xf32>
    %17 = arith.addf %16, %5 : vector<8x128xf32>
    %18 = arith.negf %17 : vector<8x128xf32>
    %19 = math.exp %18 : vector<8x128xf32>
    %cst_10 = arith.constant 1.000000e+00 : f32
    %20 = vector.broadcast %cst_10 : f32 to vector<8x128xf32>
    %21 = arith.addf %20, %19 : vector<8x128xf32>
    %22 = arith.divf %20, %21 : vector<8x128xf32>
    %23 = vector.extract_strided_slice %22 {offsets = [0, 0], sizes = [8, 32], strides = [1, 1]} : vector<8x128xf32> to vector<8x32xf32>
    %24 = vector.extract_strided_slice %22 {offsets = [0, 32], sizes = [8, 32], strides = [1, 1]} : vector<8x128xf32> to vector<8x32xf32>
    %25 = vector.extract_strided_slice %22 {offsets = [0, 96], sizes = [8, 32], strides = [1, 1]} : vector<8x128xf32> to vector<8x32xf32>
    %26 = vector.extract_strided_slice %17 {offsets = [0, 64], sizes = [8, 32], strides = [1, 1]} : vector<8x128xf32> to vector<8x32xf32>
    %27 = math.tanh %26 : vector<8x32xf32>
    %28 = arith.mulf %24, %8 : vector<8x32xf32>
    %29 = arith.mulf %23, %27 : vector<8x32xf32>
    %30 = arith.addf %28, %29 : vector<8x32xf32>
    %31 = math.tanh %30 : vector<8x32xf32>
    %32 = arith.mulf %25, %31 : vector<8x32xf32>
    %33 = vector.extract_strided_slice %0 {offsets = [0, 1], sizes = [8, 1], strides = [1, 1]} : vector<8x6xi32> to vector<8x1xi32>
    %34 = vector.broadcast %33 : vector<8x1xi32> to vector<8x30xi32>
    %35 = arith.cmpi eq, %6, %34 : vector<8x30xi32>
    %36 = arith.extui %35 : vector<8x30xi1> to vector<8x30xi32>
    %37 = arith.sitofp %36 : vector<8x30xi32> to vector<8x30xf32>
    %cst_11 = arith.constant dense<0.000000e+00> : vector<8x16xf32>
    %38 = tpu.matmul %37, %1, %cst_11 {dimension_numbers = #tpu.dot_dimension_numbers<[1], [0], [0], [1], [0, 0, 1, 1], [], []>} : vector<8x30xf32>, vector<30x16xf32>, vector<8x16xf32> -> vector<8x16xf32>
    %39 = tpu.concatenate %38, %32 in 1 : vector<8x16xf32>, vector<8x32xf32> -> vector<8x48xf32>
    %cst_12 = arith.constant dense<0.000000e+00> : vector<8x128xf32>
    %40 = tpu.matmul %39, %2, %cst_12 {dimension_numbers = #tpu.dot_dimension_numbers<[1], [0], [0], [1], [0, 0, 1, 1], [], []>} : vector<8x48xf32>, vector<48x128xf32>, vector<8x128xf32> -> vector<8x128xf32>
    %41 = arith.addf %40, %5 : vector<8x128xf32>
    %42 = arith.negf %41 : vector<8x128xf32>
    %43 = math.exp %42 : vector<8x128xf32>
    %cst_13 = arith.constant 1.000000e+00 : f32
    %44 = vector.broadcast %cst_13 : f32 to vector<8x128xf32>
    %45 = arith.addf %44, %43 : vector<8x128xf32>
    %46 = arith.divf %44, %45 : vector<8x128xf32>
    %47 = vector.extract_strided_slice %46 {offsets = [0, 0], sizes = [8, 32], strides = [1, 1]} : vector<8x128xf32> to vector<8x32xf32>
    %48 = vector.extract_strided_slice %46 {offsets = [0, 32], sizes = [8, 32], strides = [1, 1]} : vector<8x128xf32> to vector<8x32xf32>
    %49 = vector.extract_strided_slice %46 {offsets = [0, 96], sizes = [8, 32], strides = [1, 1]} : vector<8x128xf32> to vector<8x32xf32>
    %50 = vector.extract_strided_slice %41 {offsets = [0, 64], sizes = [8, 32], strides = [1, 1]} : vector<8x128xf32> to vector<8x32xf32>
    %51 = math.tanh %50 : vector<8x32xf32>
    %52 = arith.mulf %48, %30 : vector<8x32xf32>
    %53 = arith.mulf %47, %51 : vector<8x32xf32>
    %54 = arith.addf %52, %53 : vector<8x32xf32>
    %55 = math.tanh %54 : vector<8x32xf32>
    %56 = arith.mulf %49, %55 : vector<8x32xf32>
    %57 = vector.extract_strided_slice %0 {offsets = [0, 2], sizes = [8, 1], strides = [1, 1]} : vector<8x6xi32> to vector<8x1xi32>
    %58 = vector.broadcast %57 : vector<8x1xi32> to vector<8x30xi32>
    %59 = arith.cmpi eq, %6, %58 : vector<8x30xi32>
    %60 = arith.extui %59 : vector<8x30xi1> to vector<8x30xi32>
    %61 = arith.sitofp %60 : vector<8x30xi32> to vector<8x30xf32>
    %cst_14 = arith.constant dense<0.000000e+00> : vector<8x16xf32>
    %62 = tpu.matmul %61, %1, %cst_14 {dimension_numbers = #tpu.dot_dimension_numbers<[1], [0], [0], [1], [0, 0, 1, 1], [], []>} : vector<8x30xf32>, vector<30x16xf32>, vector<8x16xf32> -> vector<8x16xf32>
    %63 = tpu.concatenate %62, %56 in 1 : vector<8x16xf32>, vector<8x32xf32> -> vector<8x48xf32>
    %cst_15 = arith.constant dense<0.000000e+00> : vector<8x128xf32>
    %64 = tpu.matmul %63, %2, %cst_15 {dimension_numbers = #tpu.dot_dimension_numbers<[1], [0], [0], [1], [0, 0, 1, 1], [], []>} : vector<8x48xf32>, vector<48x128xf32>, vector<8x128xf32> -> vector<8x128xf32>
    %65 = arith.addf %64, %5 : vector<8x128xf32>
    %66 = arith.negf %65 : vector<8x128xf32>
    %67 = math.exp %66 : vector<8x128xf32>
    %cst_16 = arith.constant 1.000000e+00 : f32
    %68 = vector.broadcast %cst_16 : f32 to vector<8x128xf32>
    %69 = arith.addf %68, %67 : vector<8x128xf32>
    %70 = arith.divf %68, %69 : vector<8x128xf32>
    %71 = vector.extract_strided_slice %70 {offsets = [0, 0], sizes = [8, 32], strides = [1, 1]} : vector<8x128xf32> to vector<8x32xf32>
    %72 = vector.extract_strided_slice %70 {offsets = [0, 32], sizes = [8, 32], strides = [1, 1]} : vector<8x128xf32> to vector<8x32xf32>
    %73 = vector.extract_strided_slice %70 {offsets = [0, 96], sizes = [8, 32], strides = [1, 1]} : vector<8x128xf32> to vector<8x32xf32>
    %74 = vector.extract_strided_slice %65 {offsets = [0, 64], sizes = [8, 32], strides = [1, 1]} : vector<8x128xf32> to vector<8x32xf32>
    %75 = math.tanh %74 : vector<8x32xf32>
    %76 = arith.mulf %72, %54 : vector<8x32xf32>
    %77 = arith.mulf %71, %75 : vector<8x32xf32>
    %78 = arith.addf %76, %77 : vector<8x32xf32>
    %79 = math.tanh %78 : vector<8x32xf32>
    %80 = arith.mulf %73, %79 : vector<8x32xf32>
    %81 = vector.extract_strided_slice %0 {offsets = [0, 3], sizes = [8, 1], strides = [1, 1]} : vector<8x6xi32> to vector<8x1xi32>
    %82 = vector.broadcast %81 : vector<8x1xi32> to vector<8x30xi32>
    %83 = arith.cmpi eq, %6, %82 : vector<8x30xi32>
    %84 = arith.extui %83 : vector<8x30xi1> to vector<8x30xi32>
    %85 = arith.sitofp %84 : vector<8x30xi32> to vector<8x30xf32>
    %cst_17 = arith.constant dense<0.000000e+00> : vector<8x16xf32>
    %86 = tpu.matmul %85, %1, %cst_17 {dimension_numbers = #tpu.dot_dimension_numbers<[1], [0], [0], [1], [0, 0, 1, 1], [], []>} : vector<8x30xf32>, vector<30x16xf32>, vector<8x16xf32> -> vector<8x16xf32>
    %87 = tpu.concatenate %86, %80 in 1 : vector<8x16xf32>, vector<8x32xf32> -> vector<8x48xf32>
    %cst_18 = arith.constant dense<0.000000e+00> : vector<8x128xf32>
    %88 = tpu.matmul %87, %2, %cst_18 {dimension_numbers = #tpu.dot_dimension_numbers<[1], [0], [0], [1], [0, 0, 1, 1], [], []>} : vector<8x48xf32>, vector<48x128xf32>, vector<8x128xf32> -> vector<8x128xf32>
    %89 = arith.addf %88, %5 : vector<8x128xf32>
    %90 = arith.negf %89 : vector<8x128xf32>
    %91 = math.exp %90 : vector<8x128xf32>
    %cst_19 = arith.constant 1.000000e+00 : f32
    %92 = vector.broadcast %cst_19 : f32 to vector<8x128xf32>
    %93 = arith.addf %92, %91 : vector<8x128xf32>
    %94 = arith.divf %92, %93 : vector<8x128xf32>
    %95 = vector.extract_strided_slice %94 {offsets = [0, 0], sizes = [8, 32], strides = [1, 1]} : vector<8x128xf32> to vector<8x32xf32>
    %96 = vector.extract_strided_slice %94 {offsets = [0, 32], sizes = [8, 32], strides = [1, 1]} : vector<8x128xf32> to vector<8x32xf32>
    %97 = vector.extract_strided_slice %94 {offsets = [0, 96], sizes = [8, 32], strides = [1, 1]} : vector<8x128xf32> to vector<8x32xf32>
    %98 = vector.extract_strided_slice %89 {offsets = [0, 64], sizes = [8, 32], strides = [1, 1]} : vector<8x128xf32> to vector<8x32xf32>
    %99 = math.tanh %98 : vector<8x32xf32>
    %100 = arith.mulf %96, %78 : vector<8x32xf32>
    %101 = arith.mulf %95, %99 : vector<8x32xf32>
    %102 = arith.addf %100, %101 : vector<8x32xf32>
    %103 = math.tanh %102 : vector<8x32xf32>
    %104 = arith.mulf %97, %103 : vector<8x32xf32>
    %105 = vector.extract_strided_slice %0 {offsets = [0, 4], sizes = [8, 1], strides = [1, 1]} : vector<8x6xi32> to vector<8x1xi32>
    %106 = vector.broadcast %105 : vector<8x1xi32> to vector<8x30xi32>
    %107 = arith.cmpi eq, %6, %106 : vector<8x30xi32>
    %108 = arith.extui %107 : vector<8x30xi1> to vector<8x30xi32>
    %109 = arith.sitofp %108 : vector<8x30xi32> to vector<8x30xf32>
    %cst_20 = arith.constant dense<0.000000e+00> : vector<8x16xf32>
    %110 = tpu.matmul %109, %1, %cst_20 {dimension_numbers = #tpu.dot_dimension_numbers<[1], [0], [0], [1], [0, 0, 1, 1], [], []>} : vector<8x30xf32>, vector<30x16xf32>, vector<8x16xf32> -> vector<8x16xf32>
    %111 = tpu.concatenate %110, %104 in 1 : vector<8x16xf32>, vector<8x32xf32> -> vector<8x48xf32>
    %cst_21 = arith.constant dense<0.000000e+00> : vector<8x128xf32>
    %112 = tpu.matmul %111, %2, %cst_21 {dimension_numbers = #tpu.dot_dimension_numbers<[1], [0], [0], [1], [0, 0, 1, 1], [], []>} : vector<8x48xf32>, vector<48x128xf32>, vector<8x128xf32> -> vector<8x128xf32>
    %113 = arith.addf %112, %5 : vector<8x128xf32>
    %114 = arith.negf %113 : vector<8x128xf32>
    %115 = math.exp %114 : vector<8x128xf32>
    %cst_22 = arith.constant 1.000000e+00 : f32
    %116 = vector.broadcast %cst_22 : f32 to vector<8x128xf32>
    %117 = arith.addf %116, %115 : vector<8x128xf32>
    %118 = arith.divf %116, %117 : vector<8x128xf32>
    %119 = vector.extract_strided_slice %118 {offsets = [0, 0], sizes = [8, 32], strides = [1, 1]} : vector<8x128xf32> to vector<8x32xf32>
    %120 = vector.extract_strided_slice %118 {offsets = [0, 32], sizes = [8, 32], strides = [1, 1]} : vector<8x128xf32> to vector<8x32xf32>
    %121 = vector.extract_strided_slice %118 {offsets = [0, 96], sizes = [8, 32], strides = [1, 1]} : vector<8x128xf32> to vector<8x32xf32>
    %122 = vector.extract_strided_slice %113 {offsets = [0, 64], sizes = [8, 32], strides = [1, 1]} : vector<8x128xf32> to vector<8x32xf32>
    %123 = math.tanh %122 : vector<8x32xf32>
    %124 = arith.mulf %120, %102 : vector<8x32xf32>
    %125 = arith.mulf %119, %123 : vector<8x32xf32>
    %126 = arith.addf %124, %125 : vector<8x32xf32>
    %127 = math.tanh %126 : vector<8x32xf32>
    %128 = arith.mulf %121, %127 : vector<8x32xf32>
    %129 = vector.extract_strided_slice %0 {offsets = [0, 5], sizes = [8, 1], strides = [1, 1]} : vector<8x6xi32> to vector<8x1xi32>
    %130 = vector.broadcast %129 : vector<8x1xi32> to vector<8x30xi32>
    %131 = arith.cmpi eq, %6, %130 : vector<8x30xi32>
    %132 = arith.extui %131 : vector<8x30xi1> to vector<8x30xi32>
    %133 = arith.sitofp %132 : vector<8x30xi32> to vector<8x30xf32>
    %cst_23 = arith.constant dense<0.000000e+00> : vector<8x16xf32>
    %134 = tpu.matmul %133, %1, %cst_23 {dimension_numbers = #tpu.dot_dimension_numbers<[1], [0], [0], [1], [0, 0, 1, 1], [], []>} : vector<8x30xf32>, vector<30x16xf32>, vector<8x16xf32> -> vector<8x16xf32>
    %135 = tpu.concatenate %134, %128 in 1 : vector<8x16xf32>, vector<8x32xf32> -> vector<8x48xf32>
    %cst_24 = arith.constant dense<0.000000e+00> : vector<8x128xf32>
    %136 = tpu.matmul %135, %2, %cst_24 {dimension_numbers = #tpu.dot_dimension_numbers<[1], [0], [0], [1], [0, 0, 1, 1], [], []>} : vector<8x48xf32>, vector<48x128xf32>, vector<8x128xf32> -> vector<8x128xf32>
    %137 = arith.addf %136, %5 : vector<8x128xf32>
    %138 = arith.negf %137 : vector<8x128xf32>
    %139 = math.exp %138 : vector<8x128xf32>
    %cst_25 = arith.constant 1.000000e+00 : f32
    %140 = vector.broadcast %cst_25 : f32 to vector<8x128xf32>
    %141 = arith.addf %140, %139 : vector<8x128xf32>
    %142 = arith.divf %140, %141 : vector<8x128xf32>
    %143 = vector.extract_strided_slice %142 {offsets = [0, 0], sizes = [8, 32], strides = [1, 1]} : vector<8x128xf32> to vector<8x32xf32>
    %144 = vector.extract_strided_slice %142 {offsets = [0, 32], sizes = [8, 32], strides = [1, 1]} : vector<8x128xf32> to vector<8x32xf32>
    %145 = vector.extract_strided_slice %142 {offsets = [0, 96], sizes = [8, 32], strides = [1, 1]} : vector<8x128xf32> to vector<8x32xf32>
    %146 = vector.extract_strided_slice %137 {offsets = [0, 64], sizes = [8, 32], strides = [1, 1]} : vector<8x128xf32> to vector<8x32xf32>
    %147 = math.tanh %146 : vector<8x32xf32>
    %148 = arith.mulf %144, %126 : vector<8x32xf32>
    %149 = arith.mulf %143, %147 : vector<8x32xf32>
    %150 = arith.addf %148, %149 : vector<8x32xf32>
    %151 = math.tanh %150 : vector<8x32xf32>
    %152 = arith.mulf %145, %151 : vector<8x32xf32>
    %c0_26 = arith.constant 0 : index
    %c0_27 = arith.constant 0 : index
    %153 = vector.load %arg1[%c0_26, %c0_27] : memref<8x1xi32, #tpu.memory_space<vmem>>, vector<8x1xi32>
    %154 = tpu.iota {dimensions = array<i32: 1>} : vector<8x50xi32>
    %155 = vector.broadcast %153 : vector<8x1xi32> to vector<8x50xi32>
    %156 = arith.cmpi eq, %154, %155 : vector<8x50xi32>
    %157 = arith.extui %156 : vector<8x50xi1> to vector<8x50xi32>
    %158 = arith.sitofp %157 : vector<8x50xi32> to vector<8x50xf32>
    %c0_28 = arith.constant 0 : index
    %c0_29 = arith.constant 0 : index
    %159 = vector.load %arg3[%c0_28, %c0_29] : memref<50x16xf32, #tpu.memory_space<vmem>>, vector<50x16xf32>
    %cst_30 = arith.constant dense<0.000000e+00> : vector<8x16xf32>
    %160 = tpu.matmul %158, %159, %cst_30 {dimension_numbers = #tpu.dot_dimension_numbers<[1], [0], [0], [1], [0, 0, 1, 1], [], []>} : vector<8x50xf32>, vector<50x16xf32>, vector<8x16xf32> -> vector<8x16xf32>
    %161 = tpu.concatenate %160, %152 in 1 : vector<8x16xf32>, vector<8x32xf32> -> vector<8x48xf32>
    %c0_31 = arith.constant 0 : index
    %c0_32 = arith.constant 0 : index
    %162 = vector.load %arg6[%c0_31, %c0_32] : memref<80x128xf32, #tpu.memory_space<vmem>>, vector<80x128xf32>
    %c0_33 = arith.constant 0 : index
    %c0_34 = arith.constant 0 : index
    %163 = vector.load %arg7[%c0_33, %c0_34] : memref<1x128xf32, #tpu.memory_space<vmem>>, vector<1x128xf32>
    %cst_35 = arith.constant 0.000000e+00 : f32
    %164 = vector.broadcast %cst_35 : f32 to vector<1x32xf32>
    %cst_36 = arith.constant 0.000000e+00 : f32
    %165 = vector.broadcast %cst_36 : f32 to vector<1x32xf32>
    %166 = vector.extract_strided_slice %161 {offsets = [0, 0], sizes = [1, 48], strides = [1, 1]} : vector<8x48xf32> to vector<1x48xf32>
    %167 = tpu.concatenate %166, %164 in 1 : vector<1x48xf32>, vector<1x32xf32> -> vector<1x80xf32>
    %cst_37 = arith.constant dense<0.000000e+00> : vector<1x128xf32>
    %168 = tpu.matmul %167, %162, %cst_37 {dimension_numbers = #tpu.dot_dimension_numbers<[1], [0], [0], [1], [0, 0, 1, 1], [], []>} : vector<1x80xf32>, vector<80x128xf32>, vector<1x128xf32> -> vector<1x128xf32>
    %169 = arith.addf %168, %163 : vector<1x128xf32>
    %170 = arith.negf %169 : vector<1x128xf32>
    %171 = math.exp %170 : vector<1x128xf32>
    %cst_38 = arith.constant 1.000000e+00 : f32
    %172 = vector.broadcast %cst_38 : f32 to vector<1x128xf32>
    %173 = arith.addf %172, %171 : vector<1x128xf32>
    %174 = arith.divf %172, %173 : vector<1x128xf32>
    %175 = vector.extract_strided_slice %174 {offsets = [0, 0], sizes = [1, 32], strides = [1, 1]} : vector<1x128xf32> to vector<1x32xf32>
    %176 = vector.extract_strided_slice %174 {offsets = [0, 32], sizes = [1, 32], strides = [1, 1]} : vector<1x128xf32> to vector<1x32xf32>
    %177 = vector.extract_strided_slice %174 {offsets = [0, 96], sizes = [1, 32], strides = [1, 1]} : vector<1x128xf32> to vector<1x32xf32>
    %178 = vector.extract_strided_slice %169 {offsets = [0, 64], sizes = [1, 32], strides = [1, 1]} : vector<1x128xf32> to vector<1x32xf32>
    %179 = math.tanh %178 : vector<1x32xf32>
    %180 = arith.mulf %176, %165 : vector<1x32xf32>
    %181 = arith.mulf %175, %179 : vector<1x32xf32>
    %182 = arith.addf %180, %181 : vector<1x32xf32>
    %183 = math.tanh %182 : vector<1x32xf32>
    %184 = arith.mulf %177, %183 : vector<1x32xf32>
    %185 = vector.extract_strided_slice %161 {offsets = [1, 0], sizes = [1, 48], strides = [1, 1]} : vector<8x48xf32> to vector<1x48xf32>
    %186 = tpu.concatenate %185, %184 in 1 : vector<1x48xf32>, vector<1x32xf32> -> vector<1x80xf32>
    %cst_39 = arith.constant dense<0.000000e+00> : vector<1x128xf32>
    %187 = tpu.matmul %186, %162, %cst_39 {dimension_numbers = #tpu.dot_dimension_numbers<[1], [0], [0], [1], [0, 0, 1, 1], [], []>} : vector<1x80xf32>, vector<80x128xf32>, vector<1x128xf32> -> vector<1x128xf32>
    %188 = arith.addf %187, %163 : vector<1x128xf32>
    %189 = arith.negf %188 : vector<1x128xf32>
    %190 = math.exp %189 : vector<1x128xf32>
    %cst_40 = arith.constant 1.000000e+00 : f32
    %191 = vector.broadcast %cst_40 : f32 to vector<1x128xf32>
    %192 = arith.addf %191, %190 : vector<1x128xf32>
    %193 = arith.divf %191, %192 : vector<1x128xf32>
    %194 = vector.extract_strided_slice %193 {offsets = [0, 0], sizes = [1, 32], strides = [1, 1]} : vector<1x128xf32> to vector<1x32xf32>
    %195 = vector.extract_strided_slice %193 {offsets = [0, 32], sizes = [1, 32], strides = [1, 1]} : vector<1x128xf32> to vector<1x32xf32>
    %196 = vector.extract_strided_slice %193 {offsets = [0, 96], sizes = [1, 32], strides = [1, 1]} : vector<1x128xf32> to vector<1x32xf32>
    %197 = vector.extract_strided_slice %188 {offsets = [0, 64], sizes = [1, 32], strides = [1, 1]} : vector<1x128xf32> to vector<1x32xf32>
    %198 = math.tanh %197 : vector<1x32xf32>
    %199 = arith.mulf %195, %182 : vector<1x32xf32>
    %200 = arith.mulf %194, %198 : vector<1x32xf32>
    %201 = arith.addf %199, %200 : vector<1x32xf32>
    %202 = math.tanh %201 : vector<1x32xf32>
    %203 = arith.mulf %196, %202 : vector<1x32xf32>
    %204 = vector.extract_strided_slice %161 {offsets = [2, 0], sizes = [1, 48], strides = [1, 1]} : vector<8x48xf32> to vector<1x48xf32>
    %205 = tpu.concatenate %204, %203 in 1 : vector<1x48xf32>, vector<1x32xf32> -> vector<1x80xf32>
    %cst_41 = arith.constant dense<0.000000e+00> : vector<1x128xf32>
    %206 = tpu.matmul %205, %162, %cst_41 {dimension_numbers = #tpu.dot_dimension_numbers<[1], [0], [0], [1], [0, 0, 1, 1], [], []>} : vector<1x80xf32>, vector<80x128xf32>, vector<1x128xf32> -> vector<1x128xf32>
    %207 = arith.addf %206, %163 : vector<1x128xf32>
    %208 = arith.negf %207 : vector<1x128xf32>
    %209 = math.exp %208 : vector<1x128xf32>
    %cst_42 = arith.constant 1.000000e+00 : f32
    %210 = vector.broadcast %cst_42 : f32 to vector<1x128xf32>
    %211 = arith.addf %210, %209 : vector<1x128xf32>
    %212 = arith.divf %210, %211 : vector<1x128xf32>
    %213 = vector.extract_strided_slice %212 {offsets = [0, 0], sizes = [1, 32], strides = [1, 1]} : vector<1x128xf32> to vector<1x32xf32>
    %214 = vector.extract_strided_slice %212 {offsets = [0, 32], sizes = [1, 32], strides = [1, 1]} : vector<1x128xf32> to vector<1x32xf32>
    %215 = vector.extract_strided_slice %212 {offsets = [0, 96], sizes = [1, 32], strides = [1, 1]} : vector<1x128xf32> to vector<1x32xf32>
    %216 = vector.extract_strided_slice %207 {offsets = [0, 64], sizes = [1, 32], strides = [1, 1]} : vector<1x128xf32> to vector<1x32xf32>
    %217 = math.tanh %216 : vector<1x32xf32>
    %218 = arith.mulf %214, %201 : vector<1x32xf32>
    %219 = arith.mulf %213, %217 : vector<1x32xf32>
    %220 = arith.addf %218, %219 : vector<1x32xf32>
    %221 = math.tanh %220 : vector<1x32xf32>
    %222 = arith.mulf %215, %221 : vector<1x32xf32>
    %223 = vector.extract_strided_slice %161 {offsets = [3, 0], sizes = [1, 48], strides = [1, 1]} : vector<8x48xf32> to vector<1x48xf32>
    %224 = tpu.concatenate %223, %222 in 1 : vector<1x48xf32>, vector<1x32xf32> -> vector<1x80xf32>
    %cst_43 = arith.constant dense<0.000000e+00> : vector<1x128xf32>
    %225 = tpu.matmul %224, %162, %cst_43 {dimension_numbers = #tpu.dot_dimension_numbers<[1], [0], [0], [1], [0, 0, 1, 1], [], []>} : vector<1x80xf32>, vector<80x128xf32>, vector<1x128xf32> -> vector<1x128xf32>
    %226 = arith.addf %225, %163 : vector<1x128xf32>
    %227 = arith.negf %226 : vector<1x128xf32>
    %228 = math.exp %227 : vector<1x128xf32>
    %cst_44 = arith.constant 1.000000e+00 : f32
    %229 = vector.broadcast %cst_44 : f32 to vector<1x128xf32>
    %230 = arith.addf %229, %228 : vector<1x128xf32>
    %231 = arith.divf %229, %230 : vector<1x128xf32>
    %232 = vector.extract_strided_slice %231 {offsets = [0, 0], sizes = [1, 32], strides = [1, 1]} : vector<1x128xf32> to vector<1x32xf32>
    %233 = vector.extract_strided_slice %231 {offsets = [0, 32], sizes = [1, 32], strides = [1, 1]} : vector<1x128xf32> to vector<1x32xf32>
    %234 = vector.extract_strided_slice %231 {offsets = [0, 96], sizes = [1, 32], strides = [1, 1]} : vector<1x128xf32> to vector<1x32xf32>
    %235 = vector.extract_strided_slice %226 {offsets = [0, 64], sizes = [1, 32], strides = [1, 1]} : vector<1x128xf32> to vector<1x32xf32>
    %236 = math.tanh %235 : vector<1x32xf32>
    %237 = arith.mulf %233, %220 : vector<1x32xf32>
    %238 = arith.mulf %232, %236 : vector<1x32xf32>
    %239 = arith.addf %237, %238 : vector<1x32xf32>
    %240 = math.tanh %239 : vector<1x32xf32>
    %241 = arith.mulf %234, %240 : vector<1x32xf32>
    %242 = vector.extract_strided_slice %161 {offsets = [4, 0], sizes = [1, 48], strides = [1, 1]} : vector<8x48xf32> to vector<1x48xf32>
    %243 = tpu.concatenate %242, %241 in 1 : vector<1x48xf32>, vector<1x32xf32> -> vector<1x80xf32>
    %cst_45 = arith.constant dense<0.000000e+00> : vector<1x128xf32>
    %244 = tpu.matmul %243, %162, %cst_45 {dimension_numbers = #tpu.dot_dimension_numbers<[1], [0], [0], [1], [0, 0, 1, 1], [], []>} : vector<1x80xf32>, vector<80x128xf32>, vector<1x128xf32> -> vector<1x128xf32>
    %245 = arith.addf %244, %163 : vector<1x128xf32>
    %246 = arith.negf %245 : vector<1x128xf32>
    %247 = math.exp %246 : vector<1x128xf32>
    %cst_46 = arith.constant 1.000000e+00 : f32
    %248 = vector.broadcast %cst_46 : f32 to vector<1x128xf32>
    %249 = arith.addf %248, %247 : vector<1x128xf32>
    %250 = arith.divf %248, %249 : vector<1x128xf32>
    %251 = vector.extract_strided_slice %250 {offsets = [0, 0], sizes = [1, 32], strides = [1, 1]} : vector<1x128xf32> to vector<1x32xf32>
    %252 = vector.extract_strided_slice %250 {offsets = [0, 32], sizes = [1, 32], strides = [1, 1]} : vector<1x128xf32> to vector<1x32xf32>
    %253 = vector.extract_strided_slice %250 {offsets = [0, 96], sizes = [1, 32], strides = [1, 1]} : vector<1x128xf32> to vector<1x32xf32>
    %254 = vector.extract_strided_slice %245 {offsets = [0, 64], sizes = [1, 32], strides = [1, 1]} : vector<1x128xf32> to vector<1x32xf32>
    %255 = math.tanh %254 : vector<1x32xf32>
    %256 = arith.mulf %252, %239 : vector<1x32xf32>
    %257 = arith.mulf %251, %255 : vector<1x32xf32>
    %258 = arith.addf %256, %257 : vector<1x32xf32>
    %259 = math.tanh %258 : vector<1x32xf32>
    %260 = arith.mulf %253, %259 : vector<1x32xf32>
    %261 = vector.extract_strided_slice %161 {offsets = [5, 0], sizes = [1, 48], strides = [1, 1]} : vector<8x48xf32> to vector<1x48xf32>
    %262 = tpu.concatenate %261, %260 in 1 : vector<1x48xf32>, vector<1x32xf32> -> vector<1x80xf32>
    %cst_47 = arith.constant dense<0.000000e+00> : vector<1x128xf32>
    %263 = tpu.matmul %262, %162, %cst_47 {dimension_numbers = #tpu.dot_dimension_numbers<[1], [0], [0], [1], [0, 0, 1, 1], [], []>} : vector<1x80xf32>, vector<80x128xf32>, vector<1x128xf32> -> vector<1x128xf32>
    %264 = arith.addf %263, %163 : vector<1x128xf32>
    %265 = arith.negf %264 : vector<1x128xf32>
    %266 = math.exp %265 : vector<1x128xf32>
    %cst_48 = arith.constant 1.000000e+00 : f32
    %267 = vector.broadcast %cst_48 : f32 to vector<1x128xf32>
    %268 = arith.addf %267, %266 : vector<1x128xf32>
    %269 = arith.divf %267, %268 : vector<1x128xf32>
    %270 = vector.extract_strided_slice %269 {offsets = [0, 0], sizes = [1, 32], strides = [1, 1]} : vector<1x128xf32> to vector<1x32xf32>
    %271 = vector.extract_strided_slice %269 {offsets = [0, 32], sizes = [1, 32], strides = [1, 1]} : vector<1x128xf32> to vector<1x32xf32>
    %272 = vector.extract_strided_slice %269 {offsets = [0, 96], sizes = [1, 32], strides = [1, 1]} : vector<1x128xf32> to vector<1x32xf32>
    %273 = vector.extract_strided_slice %264 {offsets = [0, 64], sizes = [1, 32], strides = [1, 1]} : vector<1x128xf32> to vector<1x32xf32>
    %274 = math.tanh %273 : vector<1x32xf32>
    %275 = arith.mulf %271, %258 : vector<1x32xf32>
    %276 = arith.mulf %270, %274 : vector<1x32xf32>
    %277 = arith.addf %275, %276 : vector<1x32xf32>
    %278 = math.tanh %277 : vector<1x32xf32>
    %279 = arith.mulf %272, %278 : vector<1x32xf32>
    %280 = vector.extract_strided_slice %161 {offsets = [6, 0], sizes = [1, 48], strides = [1, 1]} : vector<8x48xf32> to vector<1x48xf32>
    %281 = tpu.concatenate %280, %279 in 1 : vector<1x48xf32>, vector<1x32xf32> -> vector<1x80xf32>
    %cst_49 = arith.constant dense<0.000000e+00> : vector<1x128xf32>
    %282 = tpu.matmul %281, %162, %cst_49 {dimension_numbers = #tpu.dot_dimension_numbers<[1], [0], [0], [1], [0, 0, 1, 1], [], []>} : vector<1x80xf32>, vector<80x128xf32>, vector<1x128xf32> -> vector<1x128xf32>
    %283 = arith.addf %282, %163 : vector<1x128xf32>
    %284 = arith.negf %283 : vector<1x128xf32>
    %285 = math.exp %284 : vector<1x128xf32>
    %cst_50 = arith.constant 1.000000e+00 : f32
    %286 = vector.broadcast %cst_50 : f32 to vector<1x128xf32>
    %287 = arith.addf %286, %285 : vector<1x128xf32>
    %288 = arith.divf %286, %287 : vector<1x128xf32>
    %289 = vector.extract_strided_slice %288 {offsets = [0, 0], sizes = [1, 32], strides = [1, 1]} : vector<1x128xf32> to vector<1x32xf32>
    %290 = vector.extract_strided_slice %288 {offsets = [0, 32], sizes = [1, 32], strides = [1, 1]} : vector<1x128xf32> to vector<1x32xf32>
    %291 = vector.extract_strided_slice %288 {offsets = [0, 96], sizes = [1, 32], strides = [1, 1]} : vector<1x128xf32> to vector<1x32xf32>
    %292 = vector.extract_strided_slice %283 {offsets = [0, 64], sizes = [1, 32], strides = [1, 1]} : vector<1x128xf32> to vector<1x32xf32>
    %293 = math.tanh %292 : vector<1x32xf32>
    %294 = arith.mulf %290, %277 : vector<1x32xf32>
    %295 = arith.mulf %289, %293 : vector<1x32xf32>
    %296 = arith.addf %294, %295 : vector<1x32xf32>
    %297 = math.tanh %296 : vector<1x32xf32>
    %298 = arith.mulf %291, %297 : vector<1x32xf32>
    %299 = vector.extract_strided_slice %161 {offsets = [7, 0], sizes = [1, 48], strides = [1, 1]} : vector<8x48xf32> to vector<1x48xf32>
    %300 = tpu.concatenate %299, %298 in 1 : vector<1x48xf32>, vector<1x32xf32> -> vector<1x80xf32>
    %cst_51 = arith.constant dense<0.000000e+00> : vector<1x128xf32>
    %301 = tpu.matmul %300, %162, %cst_51 {dimension_numbers = #tpu.dot_dimension_numbers<[1], [0], [0], [1], [0, 0, 1, 1], [], []>} : vector<1x80xf32>, vector<80x128xf32>, vector<1x128xf32> -> vector<1x128xf32>
    %302 = arith.addf %301, %163 : vector<1x128xf32>
    %303 = arith.negf %302 : vector<1x128xf32>
    %304 = math.exp %303 : vector<1x128xf32>
    %cst_52 = arith.constant 1.000000e+00 : f32
    %305 = vector.broadcast %cst_52 : f32 to vector<1x128xf32>
    %306 = arith.addf %305, %304 : vector<1x128xf32>
    %307 = arith.divf %305, %306 : vector<1x128xf32>
    %308 = vector.extract_strided_slice %307 {offsets = [0, 0], sizes = [1, 32], strides = [1, 1]} : vector<1x128xf32> to vector<1x32xf32>
    %309 = vector.extract_strided_slice %307 {offsets = [0, 32], sizes = [1, 32], strides = [1, 1]} : vector<1x128xf32> to vector<1x32xf32>
    %310 = vector.extract_strided_slice %307 {offsets = [0, 96], sizes = [1, 32], strides = [1, 1]} : vector<1x128xf32> to vector<1x32xf32>
    %311 = vector.extract_strided_slice %302 {offsets = [0, 64], sizes = [1, 32], strides = [1, 1]} : vector<1x128xf32> to vector<1x32xf32>
    %312 = math.tanh %311 : vector<1x32xf32>
    %313 = arith.mulf %309, %296 : vector<1x32xf32>
    %314 = arith.mulf %308, %312 : vector<1x32xf32>
    %315 = arith.addf %313, %314 : vector<1x32xf32>
    %316 = math.tanh %315 : vector<1x32xf32>
    %317 = arith.mulf %310, %316 : vector<1x32xf32>
    %318 = tpu.concatenate %184, %203, %222, %241, %260, %279, %298, %317 in 0 : vector<1x32xf32>, vector<1x32xf32>, vector<1x32xf32>, vector<1x32xf32>, vector<1x32xf32>, vector<1x32xf32>, vector<1x32xf32>, vector<1x32xf32> -> vector<8x32xf32>
    %c0_53 = arith.constant 0 : index
    %c0_54 = arith.constant 0 : index
    %319 = vector.load %arg8[%c0_53, %c0_54] : memref<32x8xf32, #tpu.memory_space<vmem>>, vector<32x8xf32>
    %cst_55 = arith.constant dense<0.000000e+00> : vector<8x8xf32>
    %320 = tpu.matmul %318, %319, %cst_55 {dimension_numbers = #tpu.dot_dimension_numbers<[1], [0], [0], [1], [0, 0, 1, 1], [], []>} : vector<8x32xf32>, vector<32x8xf32>, vector<8x8xf32> -> vector<8x8xf32>
    %c0_56 = arith.constant 0 : index
    %c0_57 = arith.constant 0 : index
    %321 = vector.load %arg9[%c0_56, %c0_57] : memref<1x8xf32, #tpu.memory_space<vmem>>, vector<1x8xf32>
    %322 = vector.broadcast %321 : vector<1x8xf32> to vector<8x8xf32>
    %323 = arith.addf %320, %322 : vector<8x8xf32>
    %cst_58 = arith.constant dense<0xFF800000> : vector<8xf32>
    %324 = vector.multi_reduction <maximumf>, %323, %cst_58 [1] : vector<8x8xf32> to vector<8xf32>
    %325 = vector.shape_cast %324 : vector<8xf32> to vector<8x1xf32>
    %326 = vector.broadcast %325 : vector<8x1xf32> to vector<8x8xf32>
    %327 = arith.subf %323, %326 : vector<8x8xf32>
    %328 = math.exp %327 : vector<8x8xf32>
    %cst_59 = arith.constant dense<0.000000e+00> : vector<8xf32>
    %329 = vector.multi_reduction <add>, %328, %cst_59 [1] : vector<8x8xf32> to vector<8xf32>
    %330 = vector.shape_cast %329 : vector<8xf32> to vector<8x1xf32>
    %331 = math.log %330 : vector<8x1xf32>
    %332 = vector.broadcast %331 : vector<8x1xf32> to vector<8x8xf32>
    %333 = arith.subf %327, %332 : vector<8x8xf32>
    %c0_60 = arith.constant 0 : index
    %c0_61 = arith.constant 0 : index
    %334 = vector.load %arg10[%c0_60, %c0_61] : memref<8x8xf32, #tpu.memory_space<vmem>>, vector<8x8xf32>
    tpu.vector_store %arg10[%c0_60, %c0_61], %333 {strides = array<i32>} : memref<8x8xf32, #tpu.memory_space<vmem>>, vector<8x8xf32>,
    return
  }
}

</mosaic_0001>

<bundles_post_ra>
// kernel: lstm_char_forward.1
= control target key start
LH: loop header
LB: loop body
LE: loop exit
PB: predicated region body
PF: predicated region fallthrough
CT: control target
= control target key end

     0   :  { %15 = vsyncpa [#allocation3], 0  ;;  %s3833_s0 = inlined_call_operand.vmem [shape: s32[8,6], index: 0, kind: input, shape index: {}]   ;;  %s3834_s1 = inlined_call_operand.vmem [shape: s32[8,1], index: 1, kind: input, shape index: {}]   ;;  %s3835_s2 = inlined_call_operand.vmem [shape: f32[30,16], index: 2, kind: input, shape index: {}]   ;;  %s3836_s3 = inlined_call_operand.vmem [shape: f32[50,16], index: 3, kind: input, shape index: {}]   ;;  %s3837_s4 = inlined_call_operand.vmem [shape: f32[48,128], index: 4, kind: input, shape index: {}]   ;;  %s3838_s5 = inlined_call_operand.vmem [shape: f32[1,128], index: 5, kind: input, shape index: {}]   ;;  %s3839_s6 = inlined_call_operand.vmem [shape: f32[80,128], index: 6, kind: input, shape index: {}]   ;;  %s3840_s7 = inlined_call_operand.vmem [shape: f32[1,128], index: 7, kind: input, shape index: {}]   ;;  %s3841_s8 = inlined_call_operand.vmem [shape: f32[32,8], index: 8, kind: input, shape index: {}]   ;;  %s3842_s9 = inlined_call_operand.hbm [shape: f32[1,8], index: 9, kind: input, shape index: {}]   ;;  %s3843_s10 = inlined_call_operand.hbm [shape: f32[8,8], index: 10, kind: output, shape index: {}]  }
   0x1   :  { %16 = vsyncpa [#allocation4], 0  ;;  %s3246_s13 = smov [#allocation2]   ;;  %s3198_s17 = scalar_lea.hbm %s3842_s9, 16 }
   0x2   :  { %s41_s14 = sshll.u32 %s3246_s13, 4  ;;  %p3199_p0 = scmp.ne.s32.totalorder %s3842_s9, %s3198_s17  ;;  %s42_s14 = int_to_ptr.vmem [resolvable:$true] %s41_s14 }
   0x3   :  { %p3202_p1 = scmp.lt.u32.totalorder %s3198_s17, %s3842_s9 }
   0x5   :  { %p3204_p2 = pnand %p3202_p1, %p3199_p0 }
   0x7   :  { %3207 = shalt.err (!%p3204_p2)
}
   0x8   :  { %s3208_s22 = scalar_lea.vmem %s42_s14, 16  ;;  %s3212_s23 = scalar_lea.vmem %s42_s14, 32 }
   0x9   :  { %p3209_p3 = scmp.ne.s32.totalorder %s42_s14, %s3208_s22  ;;  %p3213_p4 = scmp.lt.s32.totalorder %s42_s14, %s42_s14 }
   0xa   :  { %p3214_p5 = scmp.lt.s32.totalorder %s3212_s23, %s3208_s22 }
   0xc   :  { %p3215_p6 = por %p3214_p5, %p3213_p4 }
   0xe   :  { %p3216_p7 = pnand %p3215_p6, %p3209_p3 }
  0x10   :  { %3219 = shalt.err (!%p3216_p7)
}
  0x11   :  { %44 = dma.hbm_to_vmem [thread:$0]  %s3842_s9, 16, %s42_s14, [#allocation3]  }
  0x12   :  { %3242 = dma.done.wait [#allocation3], 16  }
  0x13   :  { %3243 = vsyncadd [#allocation3], 4294967280  ;;  %v3247_v0 = vmov 0   ;;  %v3248_v1 = vmov 0.0|0.0   ;;  %v3335_v2 = vld [vmem:[%s3833_s0] sm:$0xff]  ;;  %v50_v4 = vld [vmem:[%s3835_s2 + $0x8] sm:$0xff]  ;;  %v66_v20 = vlaneseq }
  0x14   :  { %3075 = vset.pattern.permute.xlu0 %v3247_v0  ;;  %2828 = vmatprep.subr.bf16.mxu0 %v3248_v1  ;;  %v49_v3 = vld [vmem:[%s3835_s2] sm:$0xff]  ;;  %v51_v6 = vld [vmem:[%s3835_s2 + $0x10] sm:$0xff]  ;;  %v52_v7 = vld [vmem:[%s3835_s2 + $0x18] sm:$0x3f]  ;;  %vm78_vm0 = vcmask 1045504   ;;  %vm3249_vm1 = vmmov 0  }
  0x15   :  { %2835 = vmatprep.subr.bf16.mxu1 %v3248_v1  ;;  %69 = vperm.xlu0 %3075, %v3335_v2   ;;  %v3344_v5 = vpack.c.bf16 %v50_v4, %v49_v3  ;;  %v3250_v8 = vmov 0.0   ;;  %v3357_v9 = vpack.c.bf16 %v52_v7, %v51_v6  ;;  %v53_v10 = vld [vmem:[%s3837_s4] sm:$0xff]  ;;  %v54_v11 = vld [vmem:[%s3837_s4 + $0x8] sm:$0xff]  ;;  %v55_v12 = vld [vmem:[%s3837_s4 + $0x10] sm:$0xff]  ;;  %vm3251_vm2 = vmmov 1   ;;  %s3253_s26 = smov 64  }
  0x16   :  { %2468 = vmatprep.mubr.msk.f32.mxu0 %vm3249_vm1, %v3250_v8  ;;  %2483 = vmatprep.mubr.msk.f32.mxu1 %vm3249_vm1, %v3250_v8  ;;  %vm3370_vm3 = vmpackc.low %vm78_vm0, %vm3251_vm2  ;;  %v3374_v14 = vpack.c.bf16 %v54_v11, %v53_v10  ;;  %v56_v15 = vld [vmem:[%s3837_s4 + $0x18] sm:$0xff]  ;;  %v57_v17 = vld [vmem:[%s3837_s4 + $0x20] sm:$0xff]  ;;  %v3399_v21 = vand.u32 127, %v66_v20  ;;  %vm74_vm4 = vcmask 244736   ;;  %vm152_vm6 = vcmask 130048   ;;  %s3255_s27 = smov 48  }
  0x17   :  { %2830 = vmatpush3.bf16.msra.mxu0 %v3344_v5  ;;  %v3380_v16 = vpack.c.bf16 %v56_v15, %v55_v12  ;;  %v58_v18 = vld [vmem:[%s3837_s4 + $0x28] sm:$0xff]  ;;  %vm154_vm7 = vcmask 392192   ;;  %v3425_v27 = vld [vmem:[%s3838_s5] ss:$0 sm:$0xff]  ;;  %v3252_v31 = vmov 1   ;;  %s3254_s5 = smov 32  }
  0x18   :  { %2831 = vmatprep.subr.bf16.mxu0 %v3248_v1  ;;  %2837 = vmatpush3.bf16.msra.mxu1 %v3374_v14  ;;  %v3394_v19 = vpack.c.bf16 %v58_v18, %v57_v17  ;;  %v3256_v51 = vmov 2   ;;  %vm1175_vm14 = vcmask 1041408   ;;  %vm1171_vm15 = vcmask 408576  }
  0x19   :  { %2838 = vmatprep.subr.bf16.mxu1 %v3248_v1  ;;  %3076 = vset.pattern.permute.xlu0 %v3252_v31  ;;  %vm1266_vm2 = vcmask 654336  }
  0x1a   :  { %253 = vperm.xlu0 %3076, %v3335_v2   ;;  %3077 = vset.pattern.permute.xlu1 %v3256_v51 }
  0x1b   :  { %2834 = vmatpush3.bf16.msk.msra.mxu0 %vm3370_vm3, %v3357_v9 }
  0x1c   :  { %2844 = vmatprep.subr.bf16.mxu0 %v3248_v1  ;;  %2840 = vmatpush3.bf16.msra.mxu1 %v3380_v16 }
  0x1d   :  { %2841 = vmatprep.subr.bf16.mxu1 %v3248_v1 }
  0x20   :  { %2843 = vmatpush3.bf16.msra.mxu1 %v3394_v19 }
  0x21   :  { %2851 = vmatprep.subr.bf16.mxu1 %v3248_v1 }
  0x94   :  { %v70_v22 = vpop.permute.xlu0 %69 }
  0x95   :  { %vm71_vm5 = vcmp.eq.s32.totalorder %v3399_v21, %v70_v22 }
  0x96   :  { %v2236_v23 = vsel %vm71_vm5, 1.0, %v3250_v8  ;;  %vm2112_vm5 = vcmask 1043456  }
  0x97   :  { %2469 = vmatmul.mubr.msk.f32.vlgmr.msra.gmra.mrb[0].mxu0 %vm74_vm4, %v2236_v23 }
  0x98   :  { %2846 = vmatpush3.bf16.msra.mxu0 %v3344_v5  ;;  %2494 = vmatprep.mubr.msk.f32.mxu0 %vm3249_vm1, %v3250_v8 }
  0x99   :  { %2847 = vmatprep.subr.bf16.mxu0 %v3248_v1  ;;  %v254_v39 = vpop.permute.xlu0 %253 }
  0x9a   :  { %vm255_vm8 = vcmp.eq.s32.totalorder %v3399_v21, %v254_v39 }
  0x9b   :  { %v2241_v40 = vsel %vm255_vm8, 1.0, %v3250_v8 }
  0x9c   :  { %2850 = vmatpush3.bf16.msk.msra.mxu0 %vm3370_vm3, %v3357_v9 }
  0x9d   :  { %2860 = vmatprep.subr.bf16.mxu0 %v3248_v1 }
  0x9f   :  { %2495 = vmatmul.mubr.msk.f32.vlgmr.msra.gmra.mrb[2].mxu0 %vm74_vm4, %v2241_v40 }
  0xa0   :  { %2862 = vmatpush3.bf16.msra.mxu0 %v3344_v5  ;;  %2520 = vmatprep.mubr.msk.f32.mxu0 %vm3249_vm1, %v3250_v8 }
  0xa1   :  { %2863 = vmatprep.subr.bf16.mxu0 %v3248_v1 }
  0xa4   :  { %2866 = vmatpush3.bf16.msk.msra.mxu0 %vm3370_vm3, %v3357_v9 }
  0xa5   :  { %2867 = vmatprep.subr.bf16.mxu0 %v3248_v1 }
 0x16a   :  { %v148_v24 = vpop.f32.mrb[0].mxu0 }
 0x16b   :  { %v153_v25 = vsel %vm152_vm6, %v148_v24, 0.0  ;;  %v2470_v26 = vpop.f32.mrb[1].mxu0  ;;  %v3257_v24 = vmov 3  }
 0x16c   :  { %2484 = vmatmul.mubr.msk.f32.vlgmr.msra.gmra.mrb[0].mxu1 %vm154_vm7, %v153_v25  ;;  %3078 = vset.pattern.permute.xlu0 %v3257_v24 }
 0x16d   :  { %2853 = vmatpush3.bf16.msra.mxu1 %v3374_v14  ;;  %2509 = vmatprep.mubr.msk.f32.mxu1 %vm3249_vm1, %v3250_v8 }
 0x16e   :  { %2854 = vmatprep.subr.bf16.mxu1 %v3248_v1 }
 0x171   :  { %2856 = vmatpush3.bf16.msra.mxu1 %v3380_v16 }
 0x172   :  { %2857 = vmatprep.subr.bf16.mxu1 %v3248_v1  ;;  %v327_v45 = vpop.f32.mrb[2].mxu0 }
 0x173   :  { %v2496_v46 = vpop.f32.mrb[3].mxu0 }
 0x175   :  { %2859 = vmatpush3.bf16.msra.mxu1 %v3394_v19 }
 0x176   :  { %2876 = vmatprep.subr.bf16.mxu1 %v3248_v1 }
 0x23f   :  { %v224_v28 = vpop.f32.mrb[0].mxu1 }
 0x240   :  { %v225_v29 = vadd.f32 %v3425_v27, %v224_v28  ;;  %v2485_v30 = vpop.f32.mrb[1].mxu1 }
 0x242   :  { %3082 = vtanh.f32 %v225_v29  ;;  %v2240_v33 = vmul.f32 -1.442695, %v225_v29 }
 0x244   :  { %3084 = vpow2.f32 %v2240_v33 }
 0x24c   :  { %v3083_v32 = vpop.eup %3082 }
 0x24d   :  { %237 = vrot.lane.b32.xlu1 %v3083_v32, %s3253_s26 }
 0x24e   :  { %v3085_v34 = vpop.eup %3084 }
 0x24f   :  { %v231_v35 = vadd.f32 1.0, %v3085_v34 }
 0x251   :  { %3086 = vrcp.f32 %v231_v35 }
 0x25b   :  { %v3087_v36 = vpop.eup %3086 }
 0x25c   :  { %v235_v41 = vmul.f32 0.0, %v3087_v36 }
 0x2bf   :  { %v238_v37 = vpop.permute.xlu1 %237 }
 0x2c0   :  { %v240_v38 = vmul.f32 %v3087_v36, %v238_v37 }
 0x2c2   :  { %242 = vrot.lane.b32.xlu1 %v240_v38, %s3254_s5 }
 0x334   :  { %v243_v42 = vpop.permute.xlu1 %242 }
 0x335   :  { %v245_v43 = vadd.f32 %v243_v42, %v235_v41 }
 0x337   :  { %3088 = vtanh.f32 %v245_v43 }
 0x341   :  { %v3089_v44 = vpop.eup %3088 }
 0x342   :  { %248 = vrot.lane.b32.xlu1 %v3089_v44, %s3253_s26 }
 0x346   :  { %434 = vperm.xlu1 %3077, %v3335_v2  }
 0x3b4   :  { %v249_v47 = vpop.permute.xlu1 %248 }
 0x3b5   :  { %v251_v48 = vmul.f32 %v3087_v36, %v249_v47 }
 0x3b7   :  { %332 = vrot.lane.b32.xlu0 %v251_v48, %s3255_s27  ;;  %v3258_v48 = vmov 4  }
 0x3c5   :  { %v435_v56 = vpop.permute.xlu1 %434 }
 0x3c6   :  { %vm436_vm9 = vcmp.eq.s32.totalorder %v3399_v21, %v435_v56 }
 0x3c7   :  { %v2246_v57 = vsel %vm436_vm9, 1.0, %v3250_v8 }
 0x3c8   :  { %2521 = vmatmul.mubr.msk.f32.vlgmr.msra.gmra.mrb[4].mxu0 %vm74_vm4, %v2246_v57 }
 0x3c9   :  { %2869 = vmatpush3.bf16.msra.mxu0 %v3374_v14  ;;  %2535 = vmatprep.mubr.msk.f32.mxu0 %vm3249_vm1, %v3250_v8 }
 0x3ca   :  { %2870 = vmatprep.subr.bf16.mxu0 %v3248_v1 }
 0x3cd   :  { %2872 = vmatpush3.bf16.msra.mxu0 %v3380_v16 }
 0x3ce   :  { %2873 = vmatprep.subr.bf16.mxu0 %v3248_v1 }
 0x3d1   :  { %2875 = vmatpush3.bf16.msra.mxu0 %v3394_v19 }
 0x3d2   :  { %2892 = vmatprep.subr.bf16.mxu0 %v3248_v1 }
 0x429   :  { %v333_v49 = vpop.permute.xlu0 %332 }
 0x42a   :  { %v335_v50 = vsel %vm152_vm6, %v327_v45, %v333_v49 }
 0x42b   :  { %2510 = vmatmul.mubr.msk.f32.vlgmr.msra.gmra.mrb[2].mxu1 %vm154_vm7, %v335_v50 }
 0x42c   :  { %2878 = vmatpush3.bf16.msra.mxu1 %v3344_v5  ;;  %2546 = vmatprep.mubr.msk.f32.mxu1 %vm3249_vm1, %v3250_v8 }
 0x42d   :  { %2879 = vmatprep.subr.bf16.mxu1 %v3248_v1 }
 0x430   :  { %2882 = vmatpush3.bf16.msk.msra.mxu1 %vm3370_vm3, %v3357_v9 }
 0x431   :  { %2883 = vmatprep.subr.bf16.mxu1 %v3248_v1 }
 0x49b   :  { %v508_v7 = vpop.f32.mrb[4].mxu0 }
 0x49c   :  { %v2522_v10 = vpop.f32.mrb[5].mxu0 }
 0x49d   :  { %v3259_v10 = vmov 5  }
 0x4fe   :  { %v405_v52 = vpop.f32.mrb[2].mxu1 }
 0x4ff   :  { %v406_v53 = vadd.f32 %v3425_v27, %v405_v52  ;;  %v2511_v54 = vpop.f32.mrb[3].mxu1 }
 0x501   :  { %3090 = vtanh.f32 %v406_v53  ;;  %v2245_v58 = vmul.f32 -1.442695, %v406_v53 }
 0x503   :  { %3092 = vpow2.f32 %v2245_v58 }
 0x50b   :  { %v3091_v55 = vpop.eup %3090 }
 0x50c   :  { %418 = vrot.lane.b32.xlu0 %v3091_v55, %s3253_s26 }
 0x50d   :  { %v3093_v59 = vpop.eup %3092 }
 0x50e   :  { %v412_v60 = vadd.f32 1.0, %v3093_v59 }
 0x510   :  { %3094 = vrcp.f32 %v412_v60 }
 0x51a   :  { %v3095_v61 = vpop.eup %3094 }
 0x51b   :  { %v416_v3 = vmul.f32 %v3095_v61, %v245_v43 }
 0x57e   :  { %v419_v62 = vpop.permute.xlu0 %418 }
 0x57f   :  { %v421_v63 = vmul.f32 %v3095_v61, %v419_v62 }
 0x581   :  { %423 = vrot.lane.b32.xlu1 %v421_v63, %s3254_s5 }
 0x5f3   :  { %v424_v4 = vpop.permute.xlu1 %423 }
 0x5f4   :  { %v426_v6 = vadd.f32 %v424_v4, %v416_v3 }
 0x5f6   :  { %3096 = vtanh.f32 %v426_v6 }
 0x600   :  { %v3097_v11 = vpop.eup %3096 }
 0x601   :  { %429 = vrot.lane.b32.xlu0 %v3097_v11, %s3253_s26 }
 0x605   :  { %615 = vperm.xlu0 %3078, %v3335_v2  }
 0x609   :  { %3079 = vset.pattern.permute.xlu0 %v3258_v48  ;;  %v1169_v48 = vld [vmem:[%s3836_s3 + $0x28] sm:$0xff] }
 0x673   :  { %v430_v12 = vpop.permute.xlu0 %429 }
 0x674   :  { %v432_v15 = vmul.f32 %v3095_v61, %v430_v12 }
 0x676   :  { %513 = vrot.lane.b32.xlu1 %v432_v15, %s3255_s27 }
 0x684   :  { %v616_v33 = vpop.permute.xlu0 %615 }
 0x685   :  { %vm617_vm10 = vcmp.eq.s32.totalorder %v3399_v21, %v616_v33 }
 0x686   :  { %v2251_v34 = vsel %vm617_vm10, 1.0, %v3250_v8 }
 0x687   :  { %2547 = vmatmul.mubr.msk.f32.vlgmr.msra.gmra.mrb[4].mxu1 %vm74_vm4, %v2251_v34  ;;  %v1157_v34 = vld [vmem:[%s3834_s1] sm:$0xff] }
 0x688   :  { %2885 = vmatpush3.bf16.msra.mxu1 %v3374_v14  ;;  %2561 = vmatprep.mubr.msk.f32.mxu1 %vm3249_vm1, %v3250_v8 }
 0x689   :  { %2886 = vmatprep.subr.bf16.mxu1 %v3248_v1 }
 0x68c   :  { %2888 = vmatpush3.bf16.msra.mxu1 %v3380_v16 }
 0x68d   :  { %2889 = vmatprep.subr.bf16.mxu1 %v3248_v1 }
 0x690   :  { %2891 = vmatpush3.bf16.msra.mxu1 %v3394_v19 }
 0x691   :  { %2908 = vmatprep.subr.bf16.mxu1 %v3248_v1 }
 0x6e8   :  { %v514_v17 = vpop.permute.xlu1 %513 }
 0x6e9   :  { %v516_v18 = vsel %vm152_vm6, %v508_v7, %v514_v17 }
 0x6ea   :  { %2536 = vmatmul.mubr.msk.f32.vlgmr.msra.gmra.mrb[6].mxu0 %vm154_vm7, %v516_v18 }
 0x6eb   :  { %2894 = vmatpush3.bf16.msra.mxu0 %v3344_v5  ;;  %2572 = vmatprep.mubr.msk.f32.mxu0 %vm3249_vm1, %v3250_v8 }
 0x6ec   :  { %2895 = vmatprep.subr.bf16.mxu0 %v3248_v1 }
 0x6ef   :  { %2898 = vmatpush3.bf16.msk.msra.mxu0 %vm3370_vm3, %v3357_v9 }
 0x6f0   :  { %2899 = vmatprep.subr.bf16.mxu0 %v3248_v1 }
 0x75a   :  { %v689_v39 = vpop.f32.mrb[4].mxu1 }
 0x75b   :  { %v2548_v40 = vpop.f32.mrb[5].mxu1 }
 0x7bd   :  { %v586_v20 = vpop.f32.mrb[6].mxu0 }
 0x7be   :  { %v587_v22 = vadd.f32 %v3425_v27, %v586_v20  ;;  %v2537_v23 = vpop.f32.mrb[7].mxu0 }
 0x7c0   :  { %3098 = vtanh.f32 %v587_v22  ;;  %v2250_v26 = vmul.f32 -1.442695, %v587_v22 }
 0x7c2   :  { %3100 = vpow2.f32 %v2250_v26 }
 0x7ca   :  { %v3099_v25 = vpop.eup %3098 }
 0x7cb   :  { %599 = vrot.lane.b32.xlu1 %v3099_v25, %s3253_s26 }
 0x7cc   :  { %v3101_v28 = vpop.eup %3100 }
 0x7cd   :  { %v593_v29 = vadd.f32 1.0, %v3101_v28 }
 0x7cf   :  { %3102 = vrcp.f32 %v593_v29 }
 0x7d9   :  { %v3103_v30 = vpop.eup %3102 }
 0x7da   :  { %v597_v35 = vmul.f32 %v3103_v30, %v426_v6 }
 0x83d   :  { %v600_v31 = vpop.permute.xlu1 %599 }
 0x83e   :  { %v602_v32 = vmul.f32 %v3103_v30, %v600_v31 }
 0x840   :  { %604 = vrot.lane.b32.xlu1 %v602_v32, %s3254_s5 }
 0x8b2   :  { %v605_v36 = vpop.permute.xlu1 %604 }
 0x8b3   :  { %v607_v37 = vadd.f32 %v605_v36, %v597_v35 }
 0x8b5   :  { %3104 = vtanh.f32 %v607_v37 }
 0x8bf   :  { %v3105_v38 = vpop.eup %3104 }
 0x8c0   :  { %610 = vrot.lane.b32.xlu0 %v3105_v38, %s3253_s26 }
 0x8c4   :  { %796 = vperm.xlu0 %3079, %v3335_v2  }
 0x8c8   :  { %3080 = vset.pattern.permute.xlu0 %v3259_v10 }
 0x932   :  { %v611_v41 = vpop.permute.xlu0 %610 }
 0x933   :  { %v613_v42 = vmul.f32 %v3103_v30, %v611_v41  ;;  %v1164_v41 = vld [vmem:[%s3836_s3] sm:$0xff] }
 0x935   :  { %694 = vrot.lane.b32.xlu1 %v613_v42, %s3255_s27  ;;  %v1165_v42 = vld [vmem:[%s3836_s3 + $0x8] sm:$0xff] }
 0x943   :  { %v797_v53 = vpop.permute.xlu0 %796 }
 0x944   :  { %vm798_vm11 = vcmp.eq.s32.totalorder %v3399_v21, %v797_v53  ;;  %v1255_v53 = vld [vmem:[%s3839_s6 + $0x8] sm:$0xff] }
 0x945   :  { %v2256_v54 = vsel %vm798_vm11, 1.0, %v3250_v8 }
 0x946   :  { %2573 = vmatmul.mubr.msk.f32.vlgmr.msra.gmra.mrb[8].mxu0 %vm74_vm4, %v2256_v54  ;;  %v1256_v54 = vld [vmem:[%s3839_s6 + $0x10] sm:$0xff] }
 0x947   :  { %2901 = vmatpush3.bf16.msra.mxu0 %v3374_v14  ;;  %2587 = vmatprep.mubr.msk.f32.mxu0 %vm3249_vm1, %v3250_v8 }
 0x948   :  { %2902 = vmatprep.subr.bf16.mxu0 %v3248_v1 }
 0x94b   :  { %2904 = vmatpush3.bf16.msra.mxu0 %v3380_v16 }
 0x94c   :  { %2905 = vmatprep.subr.bf16.mxu0 %v3248_v1 }
 0x94f   :  { %2907 = vmatpush3.bf16.msra.mxu0 %v3394_v19 }
 0x950   :  { %2924 = vmatprep.subr.bf16.mxu0 %v3248_v1 }
 0x9a7   :  { %v695_v43 = vpop.permute.xlu1 %694 }
 0x9a8   :  { %v697_v44 = vsel %vm152_vm6, %v689_v39, %v695_v43  ;;  %v1166_v43 = vld [vmem:[%s3836_s3 + $0x10] sm:$0xff] }
 0x9a9   :  { %2562 = vmatmul.mubr.msk.f32.vlgmr.msra.gmra.mrb[6].mxu1 %vm154_vm7, %v697_v44  ;;  %v2925_v44 = vpack.c.bf16 %v1165_v42, %v1164_v41 }
 0x9aa   :  { %2910 = vmatpush3.bf16.msra.mxu1 %v3344_v5  ;;  %2598 = vmatprep.mubr.msk.f32.mxu1 %vm3249_vm1, %v3250_v8 }
 0x9ab   :  { %2911 = vmatprep.subr.bf16.mxu1 %v3248_v1 }
 0x9ae   :  { %2914 = vmatpush3.bf16.msk.msra.mxu1 %vm3370_vm3, %v3357_v9  ;;  %vm2107_vm3 = vcmask 1040384  }
 0x9af   :  { %2915 = vmatprep.subr.bf16.mxu1 %v3248_v1 }
 0xa19   :  { %v870_v59 = vpop.f32.mrb[8].mxu0 }
 0xa1a   :  { %v2574_v60 = vpop.f32.mrb[9].mxu0 }
 0xa7c   :  { %v767_v45 = vpop.f32.mrb[6].mxu1 }
 0xa7d   :  { %v768_v46 = vadd.f32 %v3425_v27, %v767_v45  ;;  %v2563_v47 = vpop.f32.mrb[7].mxu1  ;;  %v1167_v45 = vld [vmem:[%s3836_s3 + $0x18] sm:$0xff] }
 0xa7e   :  { %v1168_v47 = vld [vmem:[%s3836_s3 + $0x20] sm:$0xff] }
 0xa7f   :  { %3106 = vtanh.f32 %v768_v46  ;;  %v2255_v49 = vmul.f32 -1.442695, %v768_v46  ;;  %v2928_v46 = vpack.c.bf16 %v1167_v45, %v1166_v43 }
 0xa81   :  { %3108 = vpow2.f32 %v2255_v49 }
 0xa89   :  { %v3107_v5 = vpop.eup %3106 }
 0xa8a   :  { %780 = vrot.lane.b32.xlu1 %v3107_v5, %s3253_s26  ;;  %v2931_v5 = vpack.c.bf16 %v1169_v48, %v1168_v47 }
 0xa8b   :  { %v3109_v50 = vpop.eup %3108 }
 0xa8c   :  { %v774_v51 = vadd.f32 1.0, %v3109_v50  ;;  %v1170_v50 = vld [vmem:[%s3836_s3 + $0x30] sm:$0x3] }
 0xa8e   :  { %3110 = vrcp.f32 %v774_v51 }
 0xa98   :  { %v3111_v9 = vpop.eup %3110 }
 0xa99   :  { %v778_v55 = vmul.f32 %v3111_v9, %v607_v37 }
 0xafc   :  { %v781_v13 = vpop.permute.xlu1 %780 }
 0xafd   :  { %v783_v52 = vmul.f32 %v3111_v9, %v781_v13 }
 0xaff   :  { %785 = vrot.lane.b32.xlu1 %v783_v52, %s3254_s5  ;;  %v1254_v52 = vld [vmem:[%s3839_s6] sm:$0xff] }
 0xb71   :  { %v786_v56 = vpop.permute.xlu1 %785 }
 0xb72   :  { %v788_v57 = vadd.f32 %v786_v56, %v778_v55  ;;  %v3600_v55 = vpack.c.bf16 %v1255_v53, %v1254_v52  ;;  %v1257_v56 = vld [vmem:[%s3839_s6 + $0x18] sm:$0xff] }
 0xb74   :  { %3112 = vtanh.f32 %v788_v57 }
 0xb7e   :  { %v3113_v58 = vpop.eup %3112 }
 0xb7f   :  { %791 = vrot.lane.b32.xlu0 %v3113_v58, %s3253_s26  ;;  %v1258_v58 = vld [vmem:[%s3839_s6 + $0x20] sm:$0xff] }
 0xb83   :  { %977 = vperm.xlu0 %3080, %v3335_v2  }
 0xb87   :  { %3081 = vset.pattern.permute.xlu0 %v3247_v0 }
 0xbf1   :  { %v792_v61 = vpop.permute.xlu0 %791 }
 0xbf2   :  { %v794_v62 = vmul.f32 %v3111_v9, %v792_v61  ;;  %v1260_v61 = vld [vmem:[%s3839_s6 + $0x30] sm:$0xff] }
 0xbf4   :  { %875 = vrot.lane.b32.xlu1 %v794_v62, %s3255_s27  ;;  %v1261_v62 = vld [vmem:[%s3839_s6 + $0x38] sm:$0xff] }
 0xc02   :  { %v978_v23 = vpop.permute.xlu0 %977 }
 0xc03   :  { %vm979_vm12 = vcmp.eq.s32.totalorder %v3399_v21, %v978_v23 }
 0xc04   :  { %v2261_v2 = vsel %vm979_vm12, 1.0, %v3250_v8 }
 0xc05   :  { %2599 = vmatmul.mubr.msk.f32.vlgmr.msra.gmra.mrb[8].mxu1 %vm74_vm4, %v2261_v2  ;;  %vm2110_vm4 = vcmask 1042432  }
 0xc06   :  { %2917 = vmatpush3.bf16.msra.mxu1 %v3374_v14  ;;  %2613 = vmatprep.mubr.msk.f32.mxu1 %vm3249_vm1, %v3250_v8 }
 0xc07   :  { %2918 = vmatprep.subr.bf16.mxu1 %v3248_v1 }
 0xc0a   :  { %2920 = vmatpush3.bf16.msra.mxu1 %v3380_v16 }
 0xc0b   :  { %2921 = vmatprep.subr.bf16.mxu1 %v3248_v1 }
 0xc0e   :  { %2923 = vmatpush3.bf16.msra.mxu1 %v3394_v19 }
 0xc0f   :  { %2933 = vmatprep.subr.bf16.mxu1 %v3248_v1 }
 0xc66   :  { %v876_v63 = vpop.permute.xlu1 %875 }
 0xc67   :  { %v878_v3 = vsel %vm152_vm6, %v870_v59, %v876_v63  ;;  %v1259_v59 = vld [vmem:[%s3839_s6 + $0x28] sm:$0xff] }
 0xc68   :  { %2588 = vmatmul.mubr.msk.f32.vlgmr.msra.gmra.mrb[10].mxu0 %vm154_vm7, %v878_v3  ;;  %v3618_v60 = vpack.c.bf16 %v1259_v59, %v1258_v58  ;;  %v3631_v3 = vpack.c.bf16 %v1261_v62, %v1260_v61 }
 0xc69   :  { %2630 = vmatprep.mubr.msk.f32.mxu0 %vm3249_vm1, %v3250_v8  ;;  %2926 = vmatpush3.bf16.msra.mxu0 %v2925_v44 }
 0xc6a   :  { %2927 = vmatprep.subr.bf16.mxu0 %v3248_v1 }
 0xc6d   :  { %2929 = vmatpush3.bf16.msra.mxu0 %v2928_v46 }
 0xc6e   :  { %2930 = vmatprep.subr.bf16.mxu0 %v3248_v1 }
 0xc71   :  { %2932 = vmatpush3.bf16.msra.mxu0 %v2931_v5 }
 0xc72   :  { %2628 = vmatprep.subr.mxu0 %v3250_v8 }
 0xc75   :  { %2629 = vmatpush3.msk.msra.mxu0 %vm1175_vm14, %v1170_v50 }
 0xc76   :  { %2948 = vmatprep.subr.bf16.mxu0 %v3248_v1 }
 0xcd8   :  { %v1051_v14 = vpop.f32.mrb[8].mxu1 }
 0xcd9   :  { %v2600_v28 = vpop.f32.mrb[9].mxu1 }
 0xd3b   :  { %v948_v4 = vpop.f32.mrb[10].mxu0 }
 0xd3c   :  { %v949_v6 = vadd.f32 %v3425_v27, %v948_v4  ;;  %v2589_v7 = vpop.f32.mrb[11].mxu0  ;;  %v1262_v4 = vld [vmem:[%s3839_s6 + $0x40] sm:$0xff] }
 0xd3e   :  { %3114 = vtanh.f32 %v949_v6  ;;  %v2260_v12 = vmul.f32 -1.442695, %v949_v6  ;;  %v1263_v6 = vld [vmem:[%s3839_s6 + $0x48] sm:$0xff] }
 0xd3f   :  { %v3643_v7 = vpack.c.bf16 %v1263_v6, %v1262_v4 }
 0xd40   :  { %3116 = vpow2.f32 %v2260_v12 }
 0xd48   :  { %v3115_v11 = vpop.eup %3114 }
 0xd49   :  { %961 = vrot.lane.b32.xlu1 %v3115_v11, %s3253_s26 }
 0xd4a   :  { %v3117_v15 = vpop.eup %3116 }
 0xd4b   :  { %v955_v17 = vadd.f32 1.0, %v3117_v15 }
 0xd4d   :  { %3118 = vrcp.f32 %v955_v17 }
 0xd57   :  { %v3119_v18 = vpop.eup %3118 }
 0xd58   :  { %v959_v0 = vmul.f32 %v3119_v18, %v788_v57  ;;  %v3606_v57 = vpack.c.bf16 %v1257_v56, %v1256_v54 }
 0xdbb   :  { %v962_v20 = vpop.permute.xlu1 %961 }
 0xdbc   :  { %v964_v22 = vmul.f32 %v3119_v18, %v962_v20 }
 0xdbe   :  { %966 = vrot.lane.b32.xlu1 %v964_v22, %s3254_s5  ;;  %v3675_v22 = vld [vmem:[%s3840_s7] sm:$0x1]  ;;  %s3260_s7 = smov 80  }
 0xe30   :  { %v967_v24 = vpop.permute.xlu1 %966 }
 0xe31   :  { %v969_v25 = vadd.f32 %v967_v24, %v959_v0 }
 0xe33   :  { %3120 = vtanh.f32 %v969_v25 }
 0xe3d   :  { %v3121_v26 = vpop.eup %3120 }
 0xe3e   :  { %972 = vrot.lane.b32.xlu0 %v3121_v26, %s3253_s26 }
 0xe42   :  { %1159 = vperm.xlu0 %3081, %v1157_v34  }
 0xeb0   :  { %v973_v29 = vpop.permute.xlu0 %972 }
 0xeb1   :  { %v975_v30 = vmul.f32 %v3119_v18, %v973_v29 }
 0xeb3   :  { %1056 = vrot.lane.b32.xlu1 %v975_v30, %s3255_s27 }
 0xec1   :  { %v1160_v49 = vpop.permute.xlu0 %1159 }
 0xec2   :  { %vm1161_vm13 = vcmp.eq.s32.totalorder %v3399_v21, %v1160_v49 }
 0xec3   :  { %v2266_v51 = vsel %vm1161_vm13, 1.0, %v3250_v8 }
 0xec4   :  { %2631 = vmatmul.mubr.msk.f32.vlgmr.msra.gmra.mrb[12].mxu0 %vm1171_vm15, %v2266_v51 }
 0xec5   :  { %2676 = vmatprep.mubr.msk.f32.mxu0 %vm3249_vm1, %v3250_v8  ;;  %2950 = vmatpush3.bf16.msra.mxu0 %v3600_v55 }
 0xec6   :  { %2951 = vmatprep.subr.bf16.mxu0 %v3248_v1 }
 0xec9   :  { %2953 = vmatpush3.bf16.msra.mxu0 %v3606_v57 }
 0xeca   :  { %2954 = vmatprep.subr.bf16.mxu0 %v3248_v1 }
 0xecd   :  { %2956 = vmatpush3.bf16.msra.mxu0 %v3618_v60 }
 0xece   :  { %2957 = vmatprep.subr.bf16.mxu0 %v3248_v1 }
 0xed1   :  { %2959 = vmatpush3.bf16.msra.mxu0 %v3631_v3 }
 0xed2   :  { %2960 = vmatprep.subr.bf16.mxu0 %v3248_v1 }
 0xed5   :  { %2962 = vmatpush3.bf16.msra.mxu0 %v3643_v7 }
 0xed6   :  { %2978 = vmatprep.subr.bf16.mxu0 %v3248_v1 }
 0xf25   :  { %v1057_v16 = vpop.permute.xlu1 %1056 }
 0xf26   :  { %v1059_v31 = vsel %vm152_vm6, %v1051_v14, %v1057_v16 }
 0xf27   :  { %2614 = vmatmul.mubr.msk.f32.vlgmr.msra.gmra.mrb[10].mxu1 %vm154_vm7, %v1059_v31 }
 0xf28   :  { %2653 = vmatprep.mubr.msk.f32.mxu1 %vm3249_vm1, %v3250_v8  ;;  %2935 = vmatpush3.bf16.msra.mxu1 %v3600_v55 }
 0xf29   :  { %2936 = vmatprep.subr.bf16.mxu1 %v3248_v1 }
 0xf2c   :  { %2938 = vmatpush3.bf16.msra.mxu1 %v3606_v57 }
 0xf2d   :  { %2939 = vmatprep.subr.bf16.mxu1 %v3248_v1 }
 0xf30   :  { %2941 = vmatpush3.bf16.msra.mxu1 %v3618_v60 }
 0xf31   :  { %2942 = vmatprep.subr.bf16.mxu1 %v3248_v1 }
 0xf34   :  { %2944 = vmatpush3.bf16.msra.mxu1 %v3631_v3 }
 0xf35   :  { %2945 = vmatprep.subr.bf16.mxu1 %v3248_v1 }
 0xf38   :  { %2947 = vmatpush3.bf16.msra.mxu1 %v3643_v7 }
 0xf39   :  { %2963 = vmatprep.subr.bf16.mxu1 %v3248_v1 }
 0xf97   :  { %v1245_v10 = vpop.f32.mrb[12].mxu0 }
 0xf98   :  { %v2632_v11 = vpop.f32.mrb[13].mxu0 }
 0xffa   :  { %v1129_v19 = vpop.f32.mrb[10].mxu1 }
 0xffb   :  { %v1130_v32 = vadd.f32 %v3425_v27, %v1129_v19  ;;  %v2615_v33 = vpop.f32.mrb[11].mxu1 }
 0xffd   :  { %3122 = vtanh.f32 %v1130_v32  ;;  %v2265_v36 = vmul.f32 -1.442695, %v1130_v32 }
 0xfff   :  { %3124 = vpow2.f32 %v2265_v36 }
0x1007   :  { %v3123_v35 = vpop.eup %3122 }
0x1008   :  { %1142 = vrot.lane.b32.xlu1 %v3123_v35, %s3253_s26 }
0x1009   :  { %v3125_v37 = vpop.eup %3124 }
0x100a   :  { %v1136_v38 = vadd.f32 1.0, %v3125_v37 }
0x100c   :  { %3126 = vrcp.f32 %v1136_v38 }
0x1016   :  { %v3556_v39 = vpop.eup %3126 }
0x1017   :  { %v1140_v21 = vmul.f32 %v3556_v39, %v969_v25 }
0x107a   :  { %v1143_v40 = vpop.permute.xlu1 %1142 }
0x107b   :  { %v1145_v27 = vmul.f32 %v3556_v39, %v1143_v40 }
0x107d   :  { %1147 = vrot.lane.b32.xlu1 %v1145_v27, %s3254_s5 }
0x10ef   :  { %v1148_v9 = vpop.permute.xlu1 %1147 }
0x10f0   :  { %v1150_v13 = vadd.f32 %v1148_v9, %v1140_v21 }
0x10f2   :  { %3128 = vtanh.f32 %v1150_v13 }
0x10fc   :  { %v3129_v63 = vpop.eup %3128 }
0x10fd   :  { %1153 = vrot.lane.b32.xlu0 %v3129_v63, %s3253_s26 }
0x116f   :  { %v1154_v12 = vpop.permute.xlu0 %1153 }
0x1170   :  { %v1156_v15 = vmul.f32 %v3556_v39, %v1154_v12 }
0x1172   :  { %1250 = vrot.lane.b32.xlu1 %v1156_v15, %s3255_s27 }
0x11e4   :  { %v1251_v17 = vpop.permute.xlu1 %1250 }
0x11e5   :  { %v3655_v18 = vsel %vm152_vm6, %v1245_v10, %v1251_v17  ;;  %vm2114_vm6 = vcmask 1044480  }
0x11e6   :  { %v1265_v20 = vsel %vm154_vm7, %v3655_v18, 0.0 }
0x11e7   :  { %2654 = vmatmul.mubr.msk.f32.vlgmr.msra.gmra.mrb[12].mxu1 %vm1266_vm2, %v1265_v20 }
0x11e8   :  { %2965 = vmatpush3.bf16.msra.mxu1 %v3600_v55  ;;  %2699 = vmatprep.mubr.msk.f32.mxu1 %vm3249_vm1, %v3250_v8 }
0x11e9   :  { %2966 = vmatprep.subr.bf16.mxu1 %v3248_v1 }
0x11ec   :  { %2968 = vmatpush3.bf16.msra.mxu1 %v3606_v57 }
0x11ed   :  { %2969 = vmatprep.subr.bf16.mxu1 %v3248_v1 }
0x11f0   :  { %2971 = vmatpush3.bf16.msra.mxu1 %v3618_v60 }
0x11f1   :  { %2972 = vmatprep.subr.bf16.mxu1 %v3248_v1 }
0x11f4   :  { %2974 = vmatpush3.bf16.msra.mxu1 %v3631_v3 }
0x11f5   :  { %2975 = vmatprep.subr.bf16.mxu1 %v3248_v1 }
0x11f8   :  { %2977 = vmatpush3.bf16.msra.mxu1 %v3643_v7 }
0x11f9   :  { %2993 = vmatprep.subr.bf16.mxu1 %v3248_v1 }
0x12ba   :  { %v1336_v23 = vpop.f32.mrb[12].mxu1 }
0x12bb   :  { %v1337_v2 = vadd.f32 %v1336_v23, %v3675_v22  ;;  %v2655_v0 = vpop.f32.mrb[13].mxu1 }
0x12bd   :  { %3130 = vtanh.f32 %v1337_v2  ;;  %v2270_v25 = vmul.f32 -1.442695, %v1337_v2 }
0x12bf   :  { %3132 = vpow2.f32 %v2270_v25 }
0x12c7   :  { %v3131_v24 = vpop.eup %3130 }
0x12c8   :  { %1349 = vrot.lane.b32.xlu0 %v3131_v24, %s3253_s26 }
0x12c9   :  { %v3133_v26 = vpop.eup %3132 }
0x12ca   :  { %v1343_v14 = vadd.f32 1.0, %v3133_v26 }
0x12cc   :  { %3134 = vrcp.f32 %v1343_v14 }
0x12d6   :  { %v3135_v28 = vpop.eup %3134 }
0x12d7   :  { %v1347_v16 = vmul.f32 0.0, %v3135_v28 }
0x133a   :  { %v1350_v29 = vpop.permute.xlu0 %1349 }
0x133b   :  { %v1352_v30 = vmul.f32 %v3135_v28, %v1350_v29 }
0x133d   :  { %1354 = vrot.lane.b32.xlu1 %v1352_v30, %s3254_s5 }
0x13af   :  { %v1355_v31 = vpop.permute.xlu1 %1354 }
0x13b0   :  { %v1357_v19 = vadd.f32 %v1355_v31, %v1347_v16 }
0x13b2   :  { %3136 = vtanh.f32 %v1357_v19 }
0x13bc   :  { %v3137_v32 = vpop.eup %3136 }
0x13bd   :  { %1360 = vrot.lane.b32.xlu0 %v3137_v32, %s3253_s26 }
0x142f   :  { %v1361_v33 = vpop.permute.xlu0 %1360 }
0x1430   :  { %v3681_v34 = vmul.f32 %v3135_v28, %v1361_v33 }
0x1432   :  { %v1365_v35 = vrot.slane %v3681_v34, 7 }
0x1434   :  { %1366 = vrot.lane.b32.xlu1 %v1365_v35, %s3260_s7 }
0x14a6   :  { %v1367_v36 = vpop.permute.xlu1 %1366 }
0x14a7   :  { %v1369_v37 = vsel %vm154_vm7, %v3655_v18, %v1367_v36 }
0x14a8   :  { %v1371_v38 = vrot.slane %v1369_v37, 1 }
0x14aa   :  { %2677 = vmatmul.mubr.msk.f32.vlgmr.msra.gmra.mrb[14].mxu0 %vm1266_vm2, %v1371_v38 }
0x14ab   :  { %2980 = vmatpush3.bf16.msra.mxu0 %v3600_v55  ;;  %2722 = vmatprep.mubr.msk.f32.mxu0 %vm3249_vm1, %v3250_v8 }
0x14ac   :  { %2981 = vmatprep.subr.bf16.mxu0 %v3248_v1 }
0x14af   :  { %2983 = vmatpush3.bf16.msra.mxu0 %v3606_v57 }
0x14b0   :  { %2984 = vmatprep.subr.bf16.mxu0 %v3248_v1 }
0x14b3   :  { %2986 = vmatpush3.bf16.msra.mxu0 %v3618_v60 }
0x14b4   :  { %2987 = vmatprep.subr.bf16.mxu0 %v3248_v1 }
0x14b7   :  { %2989 = vmatpush3.bf16.msra.mxu0 %v3631_v3 }
0x14b8   :  { %2990 = vmatprep.subr.bf16.mxu0 %v3248_v1 }
0x14bb   :  { %2992 = vmatpush3.bf16.msra.mxu0 %v3643_v7 }
0x14bc   :  { %3008 = vmatprep.subr.bf16.mxu0 %v3248_v1 }
0x157d   :  { %v1440_v39 = vpop.f32.mrb[14].mxu0 }
0x157e   :  { %v1441_v40 = vadd.f32 %v1440_v39, %v3675_v22  ;;  %v2678_v27 = vpop.f32.mrb[15].mxu0 }
0x1580   :  { %3138 = vtanh.f32 %v1441_v40  ;;  %v2272_v42 = vmul.f32 -1.442695, %v1441_v40 }
0x1582   :  { %3140 = vpow2.f32 %v2272_v42 }
0x158a   :  { %v3139_v41 = vpop.eup %3138 }
0x158b   :  { %1453 = vrot.lane.b32.xlu0 %v3139_v41, %s3253_s26 }
0x158c   :  { %v3141_v43 = vpop.eup %3140 }
0x158d   :  { %v1447_v44 = vadd.f32 1.0, %v3141_v43 }
0x158f   :  { %3142 = vrcp.f32 %v1447_v44 }
0x1599   :  { %v3143_v45 = vpop.eup %3142 }
0x159a   :  { %v1451_v48 = vmul.f32 %v3143_v45, %v1357_v19 }
0x15fd   :  { %v1454_v46 = vpop.permute.xlu0 %1453 }
0x15fe   :  { %v1456_v47 = vmul.f32 %v3143_v45, %v1454_v46 }
0x1600   :  { %1458 = vrot.lane.b32.xlu1 %v1456_v47, %s3254_s5 }
0x1672   :  { %v1459_v5 = vpop.permute.xlu1 %1458 }
0x1673   :  { %v1461_v49 = vadd.f32 %v1459_v5, %v1451_v48 }
0x1675   :  { %3144 = vtanh.f32 %v1461_v49 }
0x167f   :  { %v3145_v50 = vpop.eup %3144 }
0x1680   :  { %1464 = vrot.lane.b32.xlu0 %v3145_v50, %s3253_s26 }
0x16f2   :  { %v1465_v51 = vpop.permute.xlu0 %1464 }
0x16f3   :  { %v1467_v21 = vmul.f32 %v3143_v45, %v1465_v51 }
0x16f5   :  { %v1469_v9 = vrot.slane %v1467_v21, 6  ;;  %v2092_v20 = vrot.slane %v1467_v21, 7 }
0x16f7   :  { %1470 = vrot.lane.b32.xlu1 %v1469_v9, %s3260_s7  ;;  %v2108_v25 = vsel %vm2107_vm3, %v3681_v34, %v2092_v20 }
0x1769   :  { %v1471_v13 = vpop.permute.xlu1 %1470 }
0x176a   :  { %v1473_v52 = vsel %vm154_vm7, %v3655_v18, %v1471_v13 }
0x176b   :  { %v1475_v53 = vrot.slane %v1473_v52, 2 }
0x176d   :  { %2700 = vmatmul.mubr.msk.f32.vlgmr.msra.gmra.mrb[14].mxu1 %vm1266_vm2, %v1475_v53 }
0x176e   :  { %2995 = vmatpush3.bf16.msra.mxu1 %v3600_v55  ;;  %2745 = vmatprep.mubr.msk.f32.mxu1 %vm3249_vm1, %v3250_v8 }
0x176f   :  { %2996 = vmatprep.subr.bf16.mxu1 %v3248_v1 }
0x1772   :  { %2998 = vmatpush3.bf16.msra.mxu1 %v3606_v57 }
0x1773   :  { %2999 = vmatprep.subr.bf16.mxu1 %v3248_v1 }
0x1776   :  { %3001 = vmatpush3.bf16.msra.mxu1 %v3618_v60 }
0x1777   :  { %3002 = vmatprep.subr.bf16.mxu1 %v3248_v1 }
0x177a   :  { %3004 = vmatpush3.bf16.msra.mxu1 %v3631_v3 }
0x177b   :  { %3005 = vmatprep.subr.bf16.mxu1 %v3248_v1 }
0x177e   :  { %3007 = vmatpush3.bf16.msra.mxu1 %v3643_v7 }
0x177f   :  { %3023 = vmatprep.subr.bf16.mxu1 %v3248_v1 }
0x1840   :  { %v1544_v54 = vpop.f32.mrb[14].mxu1 }
0x1841   :  { %v1545_v56 = vadd.f32 %v1544_v54, %v3675_v22  ;;  %v2701_v58 = vpop.f32.mrb[15].mxu1 }
0x1843   :  { %3146 = vtanh.f32 %v1545_v56  ;;  %v2274_v61 = vmul.f32 -1.442695, %v1545_v56 }
0x1845   :  { %3148 = vpow2.f32 %v2274_v61 }
0x184d   :  { %v3147_v59 = vpop.eup %3146 }
0x184e   :  { %1557 = vrot.lane.b32.xlu0 %v3147_v59, %s3253_s26 }
0x184f   :  { %v3149_v62 = vpop.eup %3148 }
0x1850   :  { %v1551_v63 = vadd.f32 1.0, %v3149_v62 }
0x1852   :  { %3150 = vrcp.f32 %v1551_v63 }
0x185c   :  { %v3151_v4 = vpop.eup %3150 }
0x185d   :  { %v1555_v11 = vmul.f32 %v3151_v4, %v1461_v49 }
0x18c0   :  { %v1558_v6 = vpop.permute.xlu0 %1557 }
0x18c1   :  { %v1560_v10 = vmul.f32 %v3151_v4, %v1558_v6 }
0x18c3   :  { %1562 = vrot.lane.b32.xlu1 %v1560_v10, %s3254_s5 }
0x1935   :  { %v1563_v12 = vpop.permute.xlu1 %1562 }
0x1936   :  { %v1565_v15 = vadd.f32 %v1563_v12, %v1555_v11 }
0x1938   :  { %3152 = vtanh.f32 %v1565_v15 }
0x1942   :  { %v3153_v17 = vpop.eup %3152 }
0x1943   :  { %1568 = vrot.lane.b32.xlu0 %v3153_v17, %s3253_s26 }
0x19b5   :  { %v1569_v23 = vpop.permute.xlu0 %1568 }
0x19b6   :  { %v1571_v2 = vmul.f32 %v3151_v4, %v1569_v23 }
0x19b8   :  { %v1573_v0 = vrot.slane %v1571_v2, 5  ;;  %v2094_v24 = vrot.slane %v1571_v2, 6 }
0x19ba   :  { %v2109_v26 = vsel %vm1175_vm14, %v2108_v25, %v2094_v24  ;;  %1574 = vrot.lane.b32.xlu1 %v1573_v0, %s3260_s7 }
0x1a2c   :  { %v1575_v14 = vpop.permute.xlu1 %1574 }
0x1a2d   :  { %v1577_v28 = vsel %vm154_vm7, %v3655_v18, %v1575_v14 }
0x1a2e   :  { %v1579_v29 = vrot.slane %v1577_v28, 3 }
0x1a30   :  { %2723 = vmatmul.mubr.msk.f32.vlgmr.msra.gmra.mrb[16].mxu0 %vm1266_vm2, %v1579_v29 }
0x1a31   :  { %3010 = vmatpush3.bf16.msra.mxu0 %v3600_v55  ;;  %2768 = vmatprep.mubr.msk.f32.mxu0 %vm3249_vm1, %v3250_v8 }
0x1a32   :  { %3011 = vmatprep.subr.bf16.mxu0 %v3248_v1 }
0x1a35   :  { %3013 = vmatpush3.bf16.msra.mxu0 %v3606_v57 }
0x1a36   :  { %3014 = vmatprep.subr.bf16.mxu0 %v3248_v1 }
0x1a39   :  { %3016 = vmatpush3.bf16.msra.mxu0 %v3618_v60 }
0x1a3a   :  { %3017 = vmatprep.subr.bf16.mxu0 %v3248_v1 }
0x1a3d   :  { %3019 = vmatpush3.bf16.msra.mxu0 %v3631_v3 }
0x1a3e   :  { %3020 = vmatprep.subr.bf16.mxu0 %v3248_v1 }
0x1a41   :  { %3022 = vmatpush3.bf16.msra.mxu0 %v3643_v7 }
0x1a42   :  { %3038 = vmatprep.subr.bf16.mxu0 %v3248_v1 }
0x1b03   :  { %v1648_v30 = vpop.f32.mrb[16].mxu0 }
0x1b04   :  { %v1649_v16 = vadd.f32 %v1648_v30, %v3675_v22  ;;  %v2724_v31 = vpop.f32.mrb[17].mxu0 }
0x1b06   :  { %3154 = vtanh.f32 %v1649_v16  ;;  %v2276_v32 = vmul.f32 -1.442695, %v1649_v16 }
0x1b08   :  { %3156 = vpow2.f32 %v2276_v32 }
0x1b10   :  { %v3155_v19 = vpop.eup %3154 }
0x1b11   :  { %1661 = vrot.lane.b32.xlu0 %v3155_v19, %s3253_s26 }
0x1b12   :  { %v3157_v33 = vpop.eup %3156 }
0x1b13   :  { %v1655_v34 = vadd.f32 1.0, %v3157_v33 }
0x1b15   :  { %3158 = vrcp.f32 %v1655_v34 }
0x1b1f   :  { %v3159_v35 = vpop.eup %3158 }
0x1b20   :  { %v1659_v38 = vmul.f32 %v3159_v35, %v1565_v15 }
0x1b83   :  { %v1662_v36 = vpop.permute.xlu0 %1661 }
0x1b84   :  { %v1664_v37 = vmul.f32 %v3159_v35, %v1662_v36 }
0x1b86   :  { %1666 = vrot.lane.b32.xlu1 %v1664_v37, %s3254_s5 }
0x1bf8   :  { %v1667_v39 = vpop.permute.xlu1 %1666 }
0x1bf9   :  { %v1669_v40 = vadd.f32 %v1667_v39, %v1659_v38 }
0x1bfb   :  { %3160 = vtanh.f32 %v1669_v40 }
0x1c05   :  { %v3161_v27 = vpop.eup %3160 }
0x1c06   :  { %1672 = vrot.lane.b32.xlu0 %v3161_v27, %s3253_s26 }
0x1c78   :  { %v1673_v41 = vpop.permute.xlu0 %1672 }
0x1c79   :  { %v1675_v42 = vmul.f32 %v3159_v35, %v1673_v41 }
0x1c7b   :  { %v1677_v43 = vrot.slane %v1675_v42, 4  ;;  %v2096_v44 = vrot.slane %v1675_v42, 5 }
0x1c7d   :  { %v2111_v45 = vsel %vm2110_vm4, %v2109_v26, %v2096_v44  ;;  %1678 = vrot.lane.b32.xlu1 %v1677_v43, %s3260_s7 }
0x1cef   :  { %v1679_v46 = vpop.permute.xlu1 %1678 }
0x1cf0   :  { %v1681_v47 = vsel %vm154_vm7, %v3655_v18, %v1679_v46 }
0x1cf1   :  { %v1683_v48 = vrot.slane %v1681_v47, 4 }
0x1cf3   :  { %2746 = vmatmul.mubr.msk.f32.vlgmr.msra.gmra.mrb[16].mxu1 %vm1266_vm2, %v1683_v48 }
0x1cf4   :  { %3025 = vmatpush3.bf16.msra.mxu1 %v3600_v55  ;;  %2791 = vmatprep.mubr.msk.f32.mxu1 %vm3249_vm1, %v3250_v8 }
0x1cf5   :  { %3026 = vmatprep.subr.bf16.mxu1 %v3248_v1 }
0x1cf8   :  { %3028 = vmatpush3.bf16.msra.mxu1 %v3606_v57 }
0x1cf9   :  { %3029 = vmatprep.subr.bf16.mxu1 %v3248_v1 }
0x1cfc   :  { %3031 = vmatpush3.bf16.msra.mxu1 %v3618_v60 }
0x1cfd   :  { %3032 = vmatprep.subr.bf16.mxu1 %v3248_v1 }
0x1d00   :  { %3034 = vmatpush3.bf16.msra.mxu1 %v3631_v3 }
0x1d01   :  { %3035 = vmatprep.subr.bf16.mxu1 %v3248_v1 }
0x1d04   :  { %3037 = vmatpush3.bf16.msra.mxu1 %v3643_v7 }
0x1d05   :  { %3053 = vmatprep.subr.bf16.mxu1 %v3248_v1 }
0x1dc6   :  { %v1752_v5 = vpop.f32.mrb[16].mxu1 }
0x1dc7   :  { %v1753_v49 = vadd.f32 %v1752_v5, %v3675_v22  ;;  %v2747_v50 = vpop.f32.mrb[17].mxu1 }
0x1dc9   :  { %3162 = vtanh.f32 %v1753_v49  ;;  %v2278_v21 = vmul.f32 -1.442695, %v1753_v49 }
0x1dcb   :  { %3164 = vpow2.f32 %v2278_v21 }
0x1dd3   :  { %v3163_v51 = vpop.eup %3162 }
0x1dd4   :  { %1765 = vrot.lane.b32.xlu0 %v3163_v51, %s3253_s26 }
0x1dd5   :  { %v3165_v9 = vpop.eup %3164 }
0x1dd6   :  { %v1759_v13 = vadd.f32 1.0, %v3165_v9 }
0x1dd8   :  { %3166 = vrcp.f32 %v1759_v13 }
0x1de2   :  { %v3167_v52 = vpop.eup %3166 }
0x1de3   :  { %v1763_v56 = vmul.f32 %v3167_v52, %v1669_v40 }
0x1e46   :  { %v1766_v53 = vpop.permute.xlu0 %1765 }
0x1e47   :  { %v1768_v54 = vmul.f32 %v3167_v52, %v1766_v53 }
0x1e49   :  { %1770 = vrot.lane.b32.xlu1 %v1768_v54, %s3254_s5 }
0x1ebb   :  { %v1771_v58 = vpop.permute.xlu1 %1770 }
0x1ebc   :  { %v1773_v59 = vadd.f32 %v1771_v58, %v1763_v56 }
0x1ebe   :  { %3168 = vtanh.f32 %v1773_v59 }
0x1ec8   :  { %v3169_v61 = vpop.eup %3168 }
0x1ec9   :  { %1776 = vrot.lane.b32.xlu0 %v3169_v61, %s3253_s26 }
0x1f3b   :  { %v1777_v62 = vpop.permute.xlu0 %1776 }
0x1f3c   :  { %v1779_v63 = vmul.f32 %v3167_v52, %v1777_v62 }
0x1f3e   :  { %v1781_v4 = vrot.slane %v1779_v63, 3  ;;  %v2098_v6 = vrot.slane %v1779_v63, 4 }
0x1f40   :  { %v2113_v10 = vsel %vm2112_vm5, %v2111_v45, %v2098_v6  ;;  %1782 = vrot.lane.b32.xlu1 %v1781_v4, %s3260_s7  ;;  %v2120_v6 = vld [vmem:[%s3841_s8 + $0x8] sm:$0xff] }
0x1fb2   :  { %v1783_v11 = vpop.permute.xlu1 %1782 }
0x1fb3   :  { %v1785_v12 = vsel %vm154_vm7, %v3655_v18, %v1783_v11 }
0x1fb4   :  { %v1787_v15 = vrot.slane %v1785_v12, 5  ;;  %v2122_v12 = vld [vmem:[%s3841_s8 + $0x18] sm:$0xff] }
0x1fb6   :  { %2769 = vmatmul.mubr.msk.f32.vlgmr.msra.gmra.mrb[18].mxu0 %vm1266_vm2, %v1787_v15 }
0x1fb7   :  { %3040 = vmatpush3.bf16.msra.mxu0 %v3600_v55  ;;  %2814 = vmatprep.mubr.msk.f32.mxu0 %vm3249_vm1, %v3250_v8 }
0x1fb8   :  { %3041 = vmatprep.subr.bf16.mxu0 %v3248_v1 }
0x1fbb   :  { %3043 = vmatpush3.bf16.msra.mxu0 %v3606_v57 }
0x1fbc   :  { %3044 = vmatprep.subr.bf16.mxu0 %v3248_v1 }
0x1fbf   :  { %3046 = vmatpush3.bf16.msra.mxu0 %v3618_v60 }
0x1fc0   :  { %3047 = vmatprep.subr.bf16.mxu0 %v3248_v1 }
0x1fc3   :  { %3049 = vmatpush3.bf16.msra.mxu0 %v3631_v3 }
0x1fc4   :  { %3050 = vmatprep.subr.bf16.mxu0 %v3248_v1 }
0x1fc7   :  { %3052 = vmatpush3.bf16.msra.mxu0 %v3643_v7 }
0x2089   :  { %v1856_v55 = vpop.f32.mrb[18].mxu0 }
0x208a   :  { %v1857_v17 = vadd.f32 %v1856_v55, %v3675_v22  ;;  %v2770_v20 = vpop.f32.mrb[19].mxu0 }
0x208c   :  { %3170 = vtanh.f32 %v1857_v17  ;;  %v2280_v57 = vmul.f32 -1.442695, %v1857_v17 }
0x208e   :  { %3172 = vpow2.f32 %v2280_v57 }
0x2096   :  { %v3171_v23 = vpop.eup %3170 }
0x2097   :  { %1869 = vrot.lane.b32.xlu0 %v3171_v23, %s3253_s26 }
0x2098   :  { %v3173_v2 = vpop.eup %3172 }
0x2099   :  { %v1863_v60 = vadd.f32 1.0, %v3173_v2 }
0x209b   :  { %3174 = vrcp.f32 %v1863_v60  ;;  %v2285_v60 = vld [vmem:[#allocation2] ss:$0 sm:$0xff] }
0x20a5   :  { %v3175_v0 = vpop.eup %3174 }
0x20a6   :  { %v1867_v25 = vmul.f32 %v3175_v0, %v1773_v59 }
0x2109   :  { %v1870_v24 = vpop.permute.xlu0 %1869 }
0x210a   :  { %v1872_v3 = vmul.f32 %v3175_v0, %v1870_v24 }
0x210c   :  { %1874 = vrot.lane.b32.xlu1 %v1872_v3, %s3254_s5 }
0x217e   :  { %v1875_v7 = vpop.permute.xlu1 %1874 }
0x217f   :  { %v1877_v26 = vadd.f32 %v1875_v7, %v1867_v25 }
0x2181   :  { %3176 = vtanh.f32 %v1877_v26 }
0x218b   :  { %v3177_v14 = vpop.eup %3176 }
0x218c   :  { %1880 = vrot.lane.b32.xlu0 %v3177_v14, %s3253_s26 }
0x21fe   :  { %v1881_v28 = vpop.permute.xlu0 %1880 }
0x21ff   :  { %v1883_v29 = vmul.f32 %v3175_v0, %v1881_v28 }
0x2201   :  { %v1885_v30 = vrot.slane %v1883_v29, 2  ;;  %v2100_v16 = vrot.slane %v1883_v29, 3 }
0x2203   :  { %1886 = vrot.lane.b32.xlu1 %v1885_v30, %s3260_s7  ;;  %v2115_v31 = vsel %vm2114_vm6, %v2113_v10, %v2100_v16  ;;  %v2121_v10 = vld [vmem:[%s3841_s8 + $0x10] sm:$0xff] }
0x2204   :  { %v3057_v15 = vpack.c.bf16 %v2122_v12, %v2121_v10 }
0x2275   :  { %v1887_v19 = vpop.permute.xlu1 %1886 }
0x2276   :  { %v1889_v32 = vsel %vm154_vm7, %v3655_v18, %v1887_v19 }
0x2277   :  { %v1891_v33 = vrot.slane %v1889_v32, 6 }
0x2279   :  { %2792 = vmatmul.mubr.msk.f32.vlgmr.msra.gmra.mrb[18].mxu1 %vm1266_vm2, %v1891_v33 }
0x227a   :  { %2825 = vmatprep.mubr.msk.f32.mxu1 %vm3249_vm1, %v3250_v8  ;;  %vm2133_vm1 = vcmask 261120  }
0x234c   :  { %v1960_v34 = vpop.f32.mrb[18].mxu1 }
0x234d   :  { %v1961_v35 = vadd.f32 %v1960_v34, %v3675_v22  ;;  %v2793_v36 = vpop.f32.mrb[19].mxu1 }
0x234f   :  { %3178 = vtanh.f32 %v1961_v35  ;;  %v2282_v38 = vmul.f32 -1.442695, %v1961_v35 }
0x2351   :  { %3180 = vpow2.f32 %v2282_v38 }
0x2359   :  { %v3179_v37 = vpop.eup %3178 }
0x235a   :  { %1973 = vrot.lane.b32.xlu0 %v3179_v37, %s3253_s26 }
0x235b   :  { %v3181_v39 = vpop.eup %3180 }
0x235c   :  { %v1967_v40 = vadd.f32 1.0, %v3181_v39 }
0x235e   :  { %3182 = vrcp.f32 %v1967_v40 }
0x2368   :  { %v3183_v27 = vpop.eup %3182 }
0x2369   :  { %v1971_v43 = vmul.f32 %v3183_v27, %v1877_v26 }
0x23cc   :  { %v1974_v41 = vpop.permute.xlu0 %1973 }
0x23cd   :  { %v1976_v42 = vmul.f32 %v3183_v27, %v1974_v41 }
0x23cf   :  { %1978 = vrot.lane.b32.xlu1 %v1976_v42, %s3254_s5 }
0x2441   :  { %v1979_v8 = vpop.permute.xlu1 %1978 }
0x2442   :  { %v1981_v44 = vadd.f32 %v1979_v8, %v1971_v43 }
0x2444   :  { %3184 = vtanh.f32 %v1981_v44 }
0x244e   :  { %v3185_v45 = vpop.eup %3184 }
0x244f   :  { %1984 = vrot.lane.b32.xlu0 %v3185_v45, %s3253_s26 }
0x24c1   :  { %v1985_v46 = vpop.permute.xlu0 %1984 }
0x24c2   :  { %v1987_v47 = vmul.f32 %v3183_v27, %v1985_v46 }
0x24c4   :  { %v1989_v48 = vrot.slane %v1987_v47, 1  ;;  %v2102_v5 = vrot.slane %v1987_v47, 2 }
0x24c6   :  { %1990 = vrot.lane.b32.xlu1 %v1989_v48, %s3260_s7  ;;  %v2116_v49 = vsel %vm78_vm0, %v2115_v31, %v2102_v5  ;;  %vm2117_vm0 = vcmask 1046528  }
0x2538   :  { %v1991_v50 = vpop.permute.xlu1 %1990 }
0x2539   :  { %v1993_v51 = vsel %vm154_vm7, %v3655_v18, %v1991_v50  ;;  %vm2206_vm7 = vcmask 64512  }
0x253a   :  { %v1995_v21 = vrot.slane %v1993_v51, 7 }
0x253c   :  { %2815 = vmatmul.mubr.msk.f32.vlgmr.msra.gmra.mrb[20].mxu0 %vm1266_vm2, %v1995_v21 }
0x260f   :  { %v2064_v9 = vpop.f32.mrb[20].mxu0 }
0x2610   :  { %v2065_v13 = vadd.f32 %v2064_v9, %v3675_v22  ;;  %v2816_v52 = vpop.f32.mrb[21].mxu0  ;;  %v2119_v22 = vld [vmem:[%s3841_s8] sm:$0xff]  ;;  %s3261_s8 = smov [#allocation5]  }
0x2611   :  { %v3054_v11 = vpack.c.bf16 %v2120_v6, %v2119_v22 }
0x2612   :  { %3186 = vtanh.f32 %v2065_v13  ;;  %v2284_v54 = vmul.f32 -1.442695, %v2065_v13 }
0x2613   :  { %3055 = vmatpush3.bf16.msra.mxu1 %v3054_v11 }
0x2614   :  { %3188 = vpow2.f32 %v2284_v54  ;;  %3056 = vmatprep.subr.bf16.mxu1 %v3248_v1 }
0x2617   :  { %3058 = vmatpush3.bf16.msra.mxu1 %v3057_v15 }
0x261c   :  { %v3187_v53 = vpop.eup %3186 }
0x261d   :  { %2077 = vrot.lane.b32.xlu0 %v3187_v53, %s3253_s26 }
0x261e   :  { %v3189_v56 = vpop.eup %3188 }
0x261f   :  { %v2071_v58 = vadd.f32 1.0, %v3189_v56 }
0x2621   :  { %3190 = vrcp.f32 %v2071_v58 }
0x262b   :  { %v3191_v59 = vpop.eup %3190 }
0x262c   :  { %v2075_v18 = vmul.f32 %v3191_v59, %v1981_v44 }
0x268f   :  { %v2078_v61 = vpop.permute.xlu0 %2077 }
0x2690   :  { %v2080_v62 = vmul.f32 %v3191_v59, %v2078_v61 }
0x2692   :  { %2082 = vrot.lane.b32.xlu1 %v2080_v62, %s3254_s5 }
0x2704   :  { %v2083_v63 = vpop.permute.xlu1 %2082 }
0x2705   :  { %v2085_v4 = vadd.f32 %v2083_v63, %v2075_v18 }
0x2707   :  { %3192 = vtanh.f32 %v2085_v4 }
0x2711   :  { %v3193_v55 = vpop.eup %3192 }
0x2712   :  { %2088 = vrot.lane.b32.xlu0 %v3193_v55, %s3253_s26  ;;  %s2226_s26 = sshll.u32 %s3261_s8, 4  ;;  %s2227_s26 = int_to_ptr.vmem [resolvable:$true] %s2226_s26 }
0x2713   :  { %p3225_p9 = scmp.lt.s32.totalorder %s2227_s26, %s2227_s26 }
0x2784   :  { %v2089_v17 = vpop.permute.xlu0 %2088 }
0x2785   :  { %v2091_v20 = vmul.f32 %v3191_v59, %v2089_v17 }
0x2787   :  { %v2105_v23 = vrot.slane %v2091_v20, 1 }
0x2789   :  { %v2118_v57 = vsel %vm2117_vm0, %v2116_v49, %v2105_v23 }
0x278a   :  { %2131 = vrot.lane.b32.xlu1 %v2118_v57, %s3254_s5  ;;  %s3220_s5 = scalar_lea.vmem %s2227_s26, 128 }
0x278b   :  { %p3221_p8 = scmp.ne.s32.totalorder %s2227_s26, %s3220_s5  ;;  %p3226_p10 = scmp.lt.s32.totalorder %s3220_s5, %s3220_s5 }
0x278d   :  { %p3227_p11 = por %p3226_p10, %p3225_p9 }
0x278f   :  { %p3228_p12 = pnand %p3227_p11, %p3221_p8 }
0x27fc   :  { %v2132_v2 = vpop.permute.xlu1 %2131 }
0x27fd   :  { %2826 = vmatmul.mubr.msk.f32.vlgmr.msra.gmra.mrb[20].mxu1 %vm2133_vm1, %v2132_v2 }
0x28d0   :  { %v2202_v0 = vpop.f32.mrb[20].mxu1 }
0x28d1   :  { %v2203_v24 = vadd.f32 %v2285_v60, %v2202_v0  ;;  %v2827_v3 = vpop.f32.mrb[21].mxu1 }
0x28d3   :  { %v2207_v1 = vsel %vm2206_vm7, %v2203_v24, -inf }
0x28d4   :  { %2208 = vmax.xlane.f32.xlu0 %v2207_v1 }
0x2961   :  { %v2209_v25 = vpop.xlane.xlu0 %2208 }
0x2962   :  { %v2210_v7 = vsub.f32 %v2203_v24, %v2209_v25 }
0x2964   :  { %v2211_v26 = vmul.f32 1.442695, %v2210_v7 }
0x2966   :  { %3194 = vpow2.f32 %v2211_v26 }
0x2970   :  { %v3195_v14 = vpop.eup %3194 }
0x2971   :  { %v2213_v28 = vsel %vm2206_vm7, %v3195_v14, 0.0 }
0x2972   :  { %2214 = vadd.xlane.f32.xlu1 %v2213_v28 }
0x29ff   :  { %v2215_v29 = vpop.xlane.xlu1 %2214 }
0x2a00   :  { %3196 = vlog2.f32 %v2215_v29 }
0x2a0a   :  { %v3197_v30 = vpop.eup %3196 }
0x2a0b   :  { %v2217_v16 = vmul.f32 0.6931472, %v3197_v30 }
0x2a0d   :  { %v2218_v31 = vsub.f32 %v2210_v7, %v2217_v16 }
0x2a0f   :  { %2219 = vst.msk [vmem:[#allocation5] sm:$0xff] %vm2206_vm7, %v2218_v31 }
0x2a10   :  { %3231 = shalt.err (!%p3228_p12)
}
0x2a11   :  { %s3232_s4 = scalar_lea.hbm %s3843_s10, 128 }
0x2a12   :  { %p3233_p13 = scmp.ne.s32.totalorder %s3843_s10, %s3232_s4  ;;  %p3236_p0 = scmp.lt.u32.totalorder %s3232_s4, %s3843_s10 }
0x2a14   :  { %p3238_p1 = pnand %p3236_p0, %p3233_p13 }
0x2a16   :  { %3241 = shalt.err (!%p3238_p1)
}
0x2a17   :  { %2229 = dma.vmem_to_hbm [thread:$0]  %s2227_s26, 128, %s3843_s10, [#allocation4]  }
0x2a18   :  { %3244 = dma.done.wait [#allocation4], 128  }
0x2a19   :  { %3245 = vsyncadd [#allocation4], 4294967168 }
0x2a1a   :  { %2233 = vsyncpa [#allocation3], 1 }
0x2a1b   :  { %2234 = vsyncpa [#allocation4], 1 }

</bundles_post_ra>
